<compile_context>
chip_gen: v7x
topology: tpu7x:2x2x1
jax: 0.10.0
libtpu: 0.0.40
codegen_flags: <defaults>
</compile_context>

<pallas_src>
import functools

import jax
import jax.numpy as jnp
import numpy as np
from jax import lax
from jax.experimental import pallas as pl
from jax.experimental.pallas import tpu as pltpu

_LANE = 128


# --------------------------------------------------------------------------
# Kernel
# --------------------------------------------------------------------------
def scn_kernel(bias_ref,                          # SMEM (depth,)  scalar prefetch
               inp_ref, vu_ref, L_ref, vfs_ref,   # VMEM inputs
               out_ref, hold_ref, hsel_ref,       # VMEM outputs
               iw_ref, f_ref, h_ref,              # VMEM carried state (scratch)
               *, depth_tile):
    db = pl.program_id(1)                 # depth-block index
    nd = pl.num_programs(1)
    V, TB = iw_ref.shape

    row = lax.broadcasted_iota(jnp.int32, (V, TB), 0)   # visible index per sublane

    # ---- init carried state at the first depth block (once per batch tile) ----
    @pl.when(db == 0)
    def _init():
        x = inp_ref[...]                                     # (V, TB); row 0 is zero pad
        # get_first_input_weights_mdl1: row 0 = 1 - sum(inp), rows 1.. = inp
        iw_ref[...] = jnp.where(row == 0,
                                1.0 - jnp.sum(x, axis=0, keepdims=True), x)
        f_ref[...] = jnp.broadcast_to(vfs_ref[...], f_ref.shape)   # (V, TB)
        h_ref[...] = jnp.broadcast_to(vu_ref[...], h_ref.shape)    # (V, D, TB)

    # ---- statically unrolled loop over the depth steps of this block ----
    for j in range(depth_tile):
        Lw = L_ref[j]                          # (V, 1): this step's simplex weights
        bias = bias_ref[db * depth_tile + j]   # scalar read from SMEM

        iw = iw_ref[...]                       # (V, TB)
        f = f_ref[...]                         # (V, TB)
        h = h_ref[...]                         # (V, D, TB)

        # update_weights: argmin over the visible axis of iw / (L + eps).
        # Exact divide so tie-breaking matches torch.min on near-ties.
        wdiv = iw / (Lw + 1e-20)                                        # (V, TB)
        values = jnp.min(wdiv, axis=0, keepdims=True)                   # (1, TB)
        idx = jnp.min(jnp.where(wdiv == values, row, V), axis=0, keepdims=True)
        onehot = row == idx                                             # (V, TB)

        # update_inp_weights_mdl1
        iw_ref[...] = jnp.where(onehot, values, iw - values * Lw)

        # hidden_collect[i][0] = h before the update (streams to HBM as one slab)
        hold_ref[j] = h.astype(hold_ref.dtype)

        # update_h_mdl1 (contraction over V=small: keep on the VPU, not MXU)
        new_h = jnp.sum(Lw[:, :, None] * h, axis=0)                     # (D, TB)
        f_sel = jnp.sum(Lw * f, axis=0, keepdims=True) + bias           # (1, TB)
        f_ref[...] = jnp.where(onehot, f_sel, f)
        h_ref[...] = jnp.where(onehot[:, None, :], new_h[None, :, :], h)

        # hidden_collect[i][1] = h[range(B), idx, :] == new_h
        hsel_ref[j] = new_h.astype(hsel_ref.dtype)

    # out = sigmoid(bmm(iw, f)); output block is resident across the depth
    # axis and written once on the last depth block.
    @pl.when(db == nd - 1)
    def _finalize():
        out_ref[...] = jax.nn.sigmoid(
            jnp.sum(iw_ref[...] * f_ref[...], axis=0, keepdims=True))


# --------------------------------------------------------------------------
# Tiling / VMEM sizing helpers
# --------------------------------------------------------------------------
def _pad_up(x, m):
    return -(-x // m) * m


def _padded_bytes(shape, itemsize):
    """VMEM bytes of a buffer after (8, 128) last-two-dim layout padding."""
    shape = list(shape)
    if len(shape) >= 2:
        shape[-2] = _pad_up(shape[-2], 8)
    shape[-1] = _pad_up(shape[-1], 128)
    n = 1
    for s in shape:
        n *= s
    return n * itemsize


def _vmem_block_bytes(TB, Dd, V, D, collect_bytes):
    total = 0
    total += 2 * _padded_bytes((Dd, V, D, TB), collect_bytes)  # hold block (x2 bufs)
    total += 2 * _padded_bytes((Dd, D, TB), collect_bytes)     # hsel block (x2 bufs)
    total += 2 * _padded_bytes((V, TB), 4)                     # inp block  (x2 bufs)
    total += 2 * _padded_bytes((1, TB), 4)                     # out block  (x2 bufs)
    total += 2 * _padded_bytes((Dd, V, 1), 4)                  # L block    (x2 bufs)
    total += 2 * _padded_bytes((V, D, 1), 4)                   # visible_units
    total += 2 * _padded_bytes((V, 1), 4)                      # visible_fs
    total += 2 * _padded_bytes((V, TB), 4)                     # iw + f scratch
    total += _padded_bytes((V, D, TB), 4)                      # h scratch
    return total


def _divisors_desc(n):
    return [d for d in range(n, 0, -1) if n % d == 0]


def _choose_tiles(B_pad, V, D, depth, collect_bytes,
                  budget_bytes=20 * 2**20, max_tb=2048, max_depth_tile=32):
    """Pick (TB, depth_tile): large lane-dense batch tiles, blocked depth,
    keeping nb >= 2 when possible (v7x dual TensorCore) and under a VMEM budget."""
    m = B_pad // _LANE
    t_cands = [t for t in _divisors_desc(m) if t * _LANE <= max_tb] or [1]
    dd_cands = [d for d in _divisors_desc(depth) if d <= max_depth_tile] or [1]
    for t in t_cands:
        nb = m // t
        if m >= 2 and nb < 2:
            continue          # leave work for both TensorCores on v7x
        TB = t * _LANE
        for Dd in dd_cands:
            if _vmem_block_bytes(TB, Dd, V, D, collect_bytes) <= budget_bytes:
                return TB, Dd
    return _LANE, 1           # conservative fallback; always fits


# --------------------------------------------------------------------------
# Wrapper
# --------------------------------------------------------------------------
def scn_forward(inp, visible_units, L, visible_fs, biases, *,
                collect_dtype=jnp.float32):
    """SCN forward (model=1). Returns (out (B,1,1), h_old (depth,B,V,D),
    h_sel (depth,B,D)).  collect_dtype=jnp.bfloat16 halves hold/hsel HBM traffic
    if downstream consumers tolerate it."""
    B, D = inp.shape
    V = visible_units.shape[0]
    depth = L.shape[0]
    assert V == D + 1, "SCN forward requires visible_num == input_dim + 1"

    f32 = jnp.float32
    collect_dtype = jnp.dtype(collect_dtype)
    B_pad = _pad_up(B, _LANE)                    # lane-dense batch padding
    TB, Dd = _choose_tiles(B_pad, V, D, depth, collect_dtype.itemsize)
    nb = B_pad // TB
    nd = depth // Dd

    # Layout plumbing only (batch -> lane axis, zero-padded); math stays in-kernel.
    inp_t = jnp.asarray(inp, f32).T                                     # (D, B)
    inp_t = jnp.pad(inp_t, ((0, 0), (0, B_pad - B)))                    # benign zeros
    inp_vb = jnp.concatenate([jnp.zeros((1, B_pad), f32), inp_t], axis=0)  # (V, B_pad)
    vu3 = jnp.asarray(visible_units, f32).reshape(V, D, 1)
    L3 = jnp.asarray(L, f32).reshape(depth, V, 1)
    vfs2 = jnp.asarray(visible_fs, f32).reshape(V, 1)
    bias1 = jnp.asarray(biases, f32).reshape(depth)

    est = _vmem_block_bytes(TB, Dd, V, D, collect_dtype.itemsize)
    vmem_limit = int(min(48 * 2**20, max(2 * est, 16 * 2**20)))  # headroom, < v7x 64 MiB

    kernel = functools.partial(scn_kernel, depth_tile=Dd)

    out_lane, hold_lane, hsel_lane = pl.pallas_call(
        kernel,
        out_shape=(
            jax.ShapeDtypeStruct((1, B_pad), f32),
            jax.ShapeDtypeStruct((depth, V, D, B_pad), collect_dtype),
            jax.ShapeDtypeStruct((depth, D, B_pad), collect_dtype),
        ),
        grid_spec=pltpu.PrefetchScalarGridSpec(
            num_scalar_prefetch=1,                 # biases -> SMEM
            grid=(nb, nd),
            in_specs=[
                pl.BlockSpec((V, TB), lambda b, d, bias: (0, b)),          # inp (V, B_pad)
                pl.BlockSpec((V, D, 1), lambda b, d, bias: (0, 0, 0)),     # visible_units
                pl.BlockSpec((Dd, V, 1), lambda b, d, bias: (d, 0, 0)),    # L depth block
                pl.BlockSpec((V, 1), lambda b, d, bias: (0, 0)),           # visible_fs
            ],
            out_specs=(
                pl.BlockSpec((1, TB), lambda b, d, bias: (0, b)),              # out
                pl.BlockSpec((Dd, V, D, TB), lambda b, d, bias: (d, 0, 0, b)),  # hold
                pl.BlockSpec((Dd, D, TB), lambda b, d, bias: (d, 0, b)),        # hsel
            ),
            scratch_shapes=[
                pltpu.VMEM((V, TB), f32),      # iw (carried across depth blocks)
                pltpu.VMEM((V, TB), f32),      # f  (carried)
                pltpu.VMEM((V, D, TB), f32),   # h  (carried)
            ],
        ),
        compiler_params=pltpu.CompilerParams(
            dimension_semantics=("parallel", "arbitrary"),
            vmem_limit_bytes=vmem_limit),
    )(bias1, inp_vb, vu3, L3, vfs2)

    # Restore the PyTorch module's output layout; drop padded batch lanes.
    out = out_lane[0, :B].reshape(B, 1, 1)
    h_old_all = jnp.transpose(hold_lane, (0, 3, 1, 2))[:, :B]   # (depth, B, V, D)
    h_sel_all = jnp.transpose(hsel_lane, (0, 2, 1))[:, :B]      # (depth, B, D)
    return out, h_old_all, h_sel_all


# --------------------------------------------------------------------------
# Pure-numpy mirror of the PyTorch forward (model=1) for verification
# --------------------------------------------------------------------------
def scn_reference_numpy(inp, vu, L, vfs, bias):
    inp = np.asarray(inp, np.float32)
    vu = np.asarray(vu, np.float32)
    L = np.asarray(L, np.float32)
    vfs = np.asarray(vfs, np.float32)
    bias = np.asarray(bias, np.float32)
    B, D = inp.shape
    V = vu.shape[0]
    depth = L.shape[0]

    iw = np.concatenate([1.0 - inp.sum(1, keepdims=True), inp], axis=1).astype(np.float32)
    f = np.tile(vfs.reshape(1, V), (B, 1)).astype(np.float32)
    h = np.tile(vu[None], (B, 1, 1)).astype(np.float32)
    holds, hsels = [], []
    for i in range(depth):
        Lw = L[i]
        wdiv = (iw / (Lw[None, :] + np.float32(1e-20))).astype(np.float32)
        idx = wdiv.argmin(1)
        vals = wdiv[np.arange(B), idx]
        iw = (iw - vals[:, None] * Lw[None, :]).astype(np.float32)
        iw[np.arange(B), idx] = vals
        holds.append(h.copy())
        new_h = (Lw[None, :, None] * h).sum(1).astype(np.float32)
        f_sel = ((Lw[None, :] * f).sum(1) + bias[i, 0]).astype(np.float32)
        f[np.arange(B), idx] = f_sel
        h[np.arange(B), idx, :] = new_h
        hsels.append(new_h.copy())
    out = 1.0 / (1.0 + np.exp(-(iw * f).sum(1)))
    return out.reshape(B, 1, 1), np.stack(holds), np.stack(hsels)


if __name__ == "__main__":
    # B=200 exercises batch padding (-> 256 lanes) and two batch tiles (nb=2);
    # depth=3 collapses into a single depth block (nd=1).
    B, D, depth = 200, 8, 3
    V = D + 1                   # visible_num

    key = jax.random.PRNGKey(0)
    k1, k2, k3, k4, k5 = jax.random.split(key, 5)

    inp = jax.random.uniform(k1, (B, D), jnp.float32, minval=0.0, maxval=0.2)
    visible_units = jax.random.normal(k2, (V, D), dtype=jnp.float32)
    # Module init: L = ones/V, visible_fs = zeros, biases = zeros. Keep shapes but
    # add small deterministic perturbations so the kernel does non-trivial compute.
    L = jnp.ones((depth, V), jnp.float32) / V + \
        jax.random.uniform(k3, (depth, V), jnp.float32, minval=0.0, maxval=0.05)
    visible_fs = 0.1 * jax.random.normal(k4, (V, 1), dtype=jnp.float32)
    biases = 0.1 * jax.random.normal(k5, (depth, 1), dtype=jnp.float32)

    out, h_old_all, h_sel_all = scn_forward(inp, visible_units, L, visible_fs, biases)
    jax.block_until_ready((out, h_old_all, h_sel_all))

    out_ref, h_old_ref, h_sel_ref = scn_reference_numpy(inp, visible_units, L,
                                                        visible_fs, biases)
    np.testing.assert_allclose(np.asarray(out), out_ref, rtol=1e-5, atol=1e-5)
    np.testing.assert_allclose(np.asarray(h_old_all), h_old_ref, rtol=1e-5, atol=1e-5)
    np.testing.assert_allclose(np.asarray(h_sel_all), h_sel_ref, rtol=1e-5, atol=1e-5)

    print("KERNEL_OK")
</pallas_src>

<mosaic_0001>
module attributes {stable_mosaic.version = 11 : i64} {
  func.func @scn_kernel(%arg0: i32, %arg1: i32, %arg2: memref<3xf32, #tpu.memory_space<smem>>, %arg3: memref<9x128xf32, #tpu.memory_space<vmem>>, %arg4: memref<9x8x1xf32, #tpu.memory_space<vmem>>, %arg5: memref<3x9x1xf32, #tpu.memory_space<vmem>>, %arg6: memref<9x1xf32, #tpu.memory_space<vmem>>, %arg7: memref<1x128xf32, #tpu.memory_space<vmem>>, %arg8: memref<3x9x8x128xf32, #tpu.memory_space<vmem>>, %arg9: memref<3x8x128xf32, #tpu.memory_space<vmem>>, %arg10: memref<9x128xf32, #tpu.memory_space<vmem>>, %arg11: memref<9x128xf32, #tpu.memory_space<vmem>>, %arg12: memref<9x8x128xf32, #tpu.memory_space<vmem>>) attributes {dimension_semantics = [#tpu.dimension_semantics<parallel>, #tpu.dimension_semantics<arbitrary>], iteration_bounds = array<i64: 2, 1>, scalar_prefetch = 1 : i64, scratch_operands = 3 : i64, tpu.core_type = #tpu.core_type<tc>, window_params = [{transform_indices = @transform_0, window_bounds = array<i64: 9, 128>}, {pipeline_mode = #tpu.pipeline_mode<synchronous>, transform_indices = @transform_1, window_bounds = array<i64: 9, 8, 1>}, {transform_indices = @transform_2, window_bounds = array<i64: 3, 9, 1>}, {pipeline_mode = #tpu.pipeline_mode<synchronous>, transform_indices = @transform_3, window_bounds = array<i64: 9, 1>}, {transform_indices = @transform_4, window_bounds = array<i64: 1, 128>}, {transform_indices = @transform_5, window_bounds = array<i64: 3, 9, 8, 128>}, {transform_indices = @transform_6, window_bounds = array<i64: 3, 8, 128>}]} {
    %0 = tpu.iota {dimensions = array<i32: 0>} : vector<9x128xi32>
    %c0_i32 = arith.constant 0 : i32
    %1 = arith.cmpi eq, %arg1, %c0_i32 : i32
    %2 = arith.extui %1 : i1 to i32
    %c0_i32_0 = arith.constant 0 : i32
    %3 = arith.cmpi ne, %2, %c0_i32_0 : i32
    scf.if %3 {
      %c0_91 = arith.constant 0 : index
      %c0_92 = arith.constant 0 : index
      %184 = vector.load %arg3[%c0_91, %c0_92] : memref<9x128xf32, #tpu.memory_space<vmem>>, vector<9x128xf32>
      %c0_i32_93 = arith.constant 0 : i32
      %185 = vector.broadcast %c0_i32_93 : i32 to vector<9x128xi32>
      %186 = arith.cmpi eq, %0, %185 : vector<9x128xi32>
      %cst_94 = arith.constant dense<0.000000e+00> : vector<128xf32>
      %187 = vector.multi_reduction <add>, %184, %cst_94 [0] : vector<9x128xf32> to vector<128xf32>
      %188 = vector.shape_cast %187 : vector<128xf32> to vector<1x128xf32>
      %cst_95 = arith.constant 1.000000e+00 : f32
      %189 = vector.broadcast %cst_95 : f32 to vector<1x128xf32>
      %190 = arith.subf %189, %188 : vector<1x128xf32>
      %191 = vector.shape_cast %190 : vector<1x128xf32> to vector<1x128xf32>
      %192 = vector.broadcast %191 : vector<1x128xf32> to vector<9x128xf32>
      %193 = arith.select %186, %192, %184 : vector<9x128xi1>, vector<9x128xf32>
      %c0_96 = arith.constant 0 : index
      %c0_97 = arith.constant 0 : index
      %194 = vector.load %arg10[%c0_96, %c0_97] : memref<9x128xf32, #tpu.memory_space<vmem>>, vector<9x128xf32>
      tpu.vector_store %arg10[%c0_96, %c0_97], %193 {strides = array<i32>} : memref<9x128xf32, #tpu.memory_space<vmem>>, vector<9x128xf32>,
      %c0_98 = arith.constant 0 : index
      %c0_99 = arith.constant 0 : index
      %195 = vector.load %arg6[%c0_98, %c0_99] : memref<9x1xf32, #tpu.memory_space<vmem>>, vector<9x1xf32>
      %196 = vector.shape_cast %195 : vector<9x1xf32> to vector<9x1xf32>
      %197 = vector.broadcast %196 : vector<9x1xf32> to vector<9x128xf32>
      %c0_100 = arith.constant 0 : index
      %c0_101 = arith.constant 0 : index
      %198 = vector.load %arg11[%c0_100, %c0_101] : memref<9x128xf32, #tpu.memory_space<vmem>>, vector<9x128xf32>
      tpu.vector_store %arg11[%c0_100, %c0_101], %197 {strides = array<i32>} : memref<9x128xf32, #tpu.memory_space<vmem>>, vector<9x128xf32>,
      %c0_102 = arith.constant 0 : index
      %c0_103 = arith.constant 0 : index
      %c0_104 = arith.constant 0 : index
      %199 = vector.load %arg4[%c0_102, %c0_103, %c0_104] : memref<9x8x1xf32, #tpu.memory_space<vmem>>, vector<9x8x1xf32>
      %200 = vector.shape_cast %199 : vector<9x8x1xf32> to vector<9x8x1xf32>
      %201 = vector.broadcast %200 : vector<9x8x1xf32> to vector<9x8x128xf32>
      %c0_105 = arith.constant 0 : index
      %c0_106 = arith.constant 0 : index
      %c0_107 = arith.constant 0 : index
      %202 = vector.load %arg12[%c0_105, %c0_106, %c0_107] : memref<9x8x128xf32, #tpu.memory_space<vmem>>, vector<9x8x128xf32>
      tpu.vector_store %arg12[%c0_105, %c0_106, %c0_107], %201 {strides = array<i32>} : memref<9x8x128xf32, #tpu.memory_space<vmem>>, vector<9x8x128xf32>,
    } else {
    }
    %c0 = arith.constant 0 : index
    %c0_1 = arith.constant 0 : index
    %c0_2 = arith.constant 0 : index
    %4 = vector.load %arg5[%c0, %c0_1, %c0_2] : memref<3x9x1xf32, #tpu.memory_space<vmem>>, vector<1x9x1xf32>
    %5 = vector.shape_cast %4 : vector<1x9x1xf32> to vector<9x1xf32>
    %c3_i32 = arith.constant 3 : i32
    %6 = arith.muli %arg1, %c3_i32 : i32
    %c0_i32_3 = arith.constant 0 : i32
    %7 = arith.addi %6, %c0_i32_3 : i32
    %8 = arith.index_cast %7 : i32 to index
    %9 = memref.load %arg2[%8] : memref<3xf32, #tpu.memory_space<smem>>
    %c0_4 = arith.constant 0 : index
    %c0_5 = arith.constant 0 : index
    %10 = vector.load %arg10[%c0_4, %c0_5] : memref<9x128xf32, #tpu.memory_space<vmem>>, vector<9x128xf32>
    %c0_6 = arith.constant 0 : index
    %c0_7 = arith.constant 0 : index
    %11 = vector.load %arg11[%c0_6, %c0_7] : memref<9x128xf32, #tpu.memory_space<vmem>>, vector<9x128xf32>
    %c0_8 = arith.constant 0 : index
    %c0_9 = arith.constant 0 : index
    %c0_10 = arith.constant 0 : index
    %12 = vector.load %arg12[%c0_8, %c0_9, %c0_10] : memref<9x8x128xf32, #tpu.memory_space<vmem>>, vector<9x8x128xf32>
    %cst = arith.constant 9.99999968E-21 : f32
    %13 = vector.broadcast %cst : f32 to vector<9x1xf32>
    %14 = arith.addf %5, %13 : vector<9x1xf32>
    %15 = vector.broadcast %14 : vector<9x1xf32> to vector<9x128xf32>
    %16 = arith.divf %10, %15 : vector<9x128xf32>
    %cst_11 = arith.constant dense<0x7F800000> : vector<128xf32>
    %17 = vector.multi_reduction <minimumf>, %16, %cst_11 [0] : vector<9x128xf32> to vector<128xf32>
    %18 = vector.shape_cast %17 : vector<128xf32> to vector<1x128xf32>
    %19 = vector.broadcast %18 : vector<1x128xf32> to vector<9x128xf32>
    %20 = arith.cmpf oeq, %16, %19 : vector<9x128xf32>
    %c9_i32 = arith.constant 9 : i32
    %21 = vector.broadcast %c9_i32 : i32 to vector<9x128xi32>
    %22 = arith.select %20, %0, %21 : vector<9x128xi1>, vector<9x128xi32>
    %cst_12 = arith.constant dense<2147483647> : vector<128xi32>
    %23 = vector.multi_reduction <minsi>, %22, %cst_12 [0] : vector<9x128xi32> to vector<128xi32>
    %24 = vector.shape_cast %23 : vector<128xi32> to vector<1x128xi32>
    %25 = vector.broadcast %24 : vector<1x128xi32> to vector<9x128xi32>
    %26 = arith.cmpi eq, %0, %25 : vector<9x128xi32>
    %27 = vector.broadcast %18 : vector<1x128xf32> to vector<9x128xf32>
    %28 = vector.broadcast %5 : vector<9x1xf32> to vector<9x128xf32>
    %29 = arith.mulf %27, %28 : vector<9x128xf32>
    %30 = arith.subf %10, %29 : vector<9x128xf32>
    %31 = vector.shape_cast %18 : vector<1x128xf32> to vector<1x128xf32>
    %32 = vector.broadcast %31 : vector<1x128xf32> to vector<9x128xf32>
    %33 = arith.select %26, %32, %30 : vector<9x128xi1>, vector<9x128xf32>
    %c0_13 = arith.constant 0 : index
    %c0_14 = arith.constant 0 : index
    %34 = vector.load %arg10[%c0_13, %c0_14] : memref<9x128xf32, #tpu.memory_space<vmem>>, vector<9x128xf32>
    tpu.vector_store %arg10[%c0_13, %c0_14], %33 {strides = array<i32>} : memref<9x128xf32, #tpu.memory_space<vmem>>, vector<9x128xf32>,
    %c0_15 = arith.constant 0 : index
    %c0_16 = arith.constant 0 : index
    %c0_17 = arith.constant 0 : index
    %c0_18 = arith.constant 0 : index
    %35 = vector.load %arg8[%c0_15, %c0_16, %c0_17, %c0_18] : memref<3x9x8x128xf32, #tpu.memory_space<vmem>>, vector<1x9x8x128xf32>
    %36 = vector.shape_cast %35 : vector<1x9x8x128xf32> to vector<9x8x128xf32>
    %37 = vector.shape_cast %12 : vector<9x8x128xf32> to vector<1x9x8x128xf32>
    tpu.vector_store %arg8[%c0_15, %c0_16, %c0_17, %c0_18], %37 {strides = array<i32>} : memref<3x9x8x128xf32, #tpu.memory_space<vmem>>, vector<1x9x8x128xf32>,
    %38 = vector.shape_cast %5 : vector<9x1xf32> to vector<9x1x1xf32>
    %39 = vector.broadcast %38 : vector<9x1x1xf32> to vector<9x8x128xf32>
    %40 = arith.mulf %39, %12 : vector<9x8x128xf32>
    %cst_19 = arith.constant dense<0.000000e+00> : vector<8x128xf32>
    %41 = vector.multi_reduction <add>, %40, %cst_19 [0] : vector<9x8x128xf32> to vector<8x128xf32>
    %42 = vector.broadcast %5 : vector<9x1xf32> to vector<9x128xf32>
    %43 = arith.mulf %42, %11 : vector<9x128xf32>
    %cst_20 = arith.constant dense<0.000000e+00> : vector<128xf32>
    %44 = vector.multi_reduction <add>, %43, %cst_20 [0] : vector<9x128xf32> to vector<128xf32>
    %45 = vector.shape_cast %44 : vector<128xf32> to vector<1x128xf32>
    %46 = vector.broadcast %9 : f32 to vector<1x128xf32>
    %47 = arith.addf %45, %46 : vector<1x128xf32>
    %48 = vector.shape_cast %47 : vector<1x128xf32> to vector<1x128xf32>
    %49 = vector.broadcast %48 : vector<1x128xf32> to vector<9x128xf32>
    %50 = arith.select %26, %49, %11 : vector<9x128xi1>, vector<9x128xf32>
    %c0_21 = arith.constant 0 : index
    %c0_22 = arith.constant 0 : index
    %51 = vector.load %arg11[%c0_21, %c0_22] : memref<9x128xf32, #tpu.memory_space<vmem>>, vector<9x128xf32>
    tpu.vector_store %arg11[%c0_21, %c0_22], %50 {strides = array<i32>} : memref<9x128xf32, #tpu.memory_space<vmem>>, vector<9x128xf32>,
    %52 = vector.shape_cast %26 : vector<9x128xi1> to vector<9x1x128xi1>
    %53 = vector.shape_cast %41 : vector<8x128xf32> to vector<1x8x128xf32>
    %54 = vector.shape_cast %52 : vector<9x1x128xi1> to vector<9x1x128xi1>
    %55 = vector.broadcast %54 : vector<9x1x128xi1> to vector<9x8x128xi1>
    %56 = vector.shape_cast %53 : vector<1x8x128xf32> to vector<1x8x128xf32>
    %57 = vector.broadcast %56 : vector<1x8x128xf32> to vector<9x8x128xf32>
    %58 = arith.select %55, %57, %12 : vector<9x8x128xi1>, vector<9x8x128xf32>
    %c0_23 = arith.constant 0 : index
    %c0_24 = arith.constant 0 : index
    %c0_25 = arith.constant 0 : index
    %59 = vector.load %arg12[%c0_23, %c0_24, %c0_25] : memref<9x8x128xf32, #tpu.memory_space<vmem>>, vector<9x8x128xf32>
    tpu.vector_store %arg12[%c0_23, %c0_24, %c0_25], %58 {strides = array<i32>} : memref<9x8x128xf32, #tpu.memory_space<vmem>>, vector<9x8x128xf32>,
    %c0_26 = arith.constant 0 : index
    %c0_27 = arith.constant 0 : index
    %c0_28 = arith.constant 0 : index
    %60 = vector.load %arg9[%c0_26, %c0_27, %c0_28] : memref<3x8x128xf32, #tpu.memory_space<vmem>>, vector<1x8x128xf32>
    %61 = vector.shape_cast %60 : vector<1x8x128xf32> to vector<8x128xf32>
    %62 = vector.shape_cast %41 : vector<8x128xf32> to vector<1x8x128xf32>
    tpu.vector_store %arg9[%c0_26, %c0_27, %c0_28], %62 {strides = array<i32>} : memref<3x8x128xf32, #tpu.memory_space<vmem>>, vector<1x8x128xf32>,
    %c1 = arith.constant 1 : index
    %c0_29 = arith.constant 0 : index
    %c0_30 = arith.constant 0 : index
    %63 = vector.load %arg5[%c1, %c0_29, %c0_30] : memref<3x9x1xf32, #tpu.memory_space<vmem>>, vector<1x9x1xf32>
    %64 = vector.shape_cast %63 : vector<1x9x1xf32> to vector<9x1xf32>
    %c3_i32_31 = arith.constant 3 : i32
    %65 = arith.muli %arg1, %c3_i32_31 : i32
    %c1_i32 = arith.constant 1 : i32
    %66 = arith.addi %65, %c1_i32 : i32
    %67 = arith.index_cast %66 : i32 to index
    %68 = memref.load %arg2[%67] : memref<3xf32, #tpu.memory_space<smem>>
    %c0_32 = arith.constant 0 : index
    %c0_33 = arith.constant 0 : index
    %69 = vector.load %arg10[%c0_32, %c0_33] : memref<9x128xf32, #tpu.memory_space<vmem>>, vector<9x128xf32>
    %c0_34 = arith.constant 0 : index
    %c0_35 = arith.constant 0 : index
    %70 = vector.load %arg11[%c0_34, %c0_35] : memref<9x128xf32, #tpu.memory_space<vmem>>, vector<9x128xf32>
    %c0_36 = arith.constant 0 : index
    %c0_37 = arith.constant 0 : index
    %c0_38 = arith.constant 0 : index
    %71 = vector.load %arg12[%c0_36, %c0_37, %c0_38] : memref<9x8x128xf32, #tpu.memory_space<vmem>>, vector<9x8x128xf32>
    %cst_39 = arith.constant 9.99999968E-21 : f32
    %72 = vector.broadcast %cst_39 : f32 to vector<9x1xf32>
    %73 = arith.addf %64, %72 : vector<9x1xf32>
    %74 = vector.broadcast %73 : vector<9x1xf32> to vector<9x128xf32>
    %75 = arith.divf %69, %74 : vector<9x128xf32>
    %cst_40 = arith.constant dense<0x7F800000> : vector<128xf32>
    %76 = vector.multi_reduction <minimumf>, %75, %cst_40 [0] : vector<9x128xf32> to vector<128xf32>
    %77 = vector.shape_cast %76 : vector<128xf32> to vector<1x128xf32>
    %78 = vector.broadcast %77 : vector<1x128xf32> to vector<9x128xf32>
    %79 = arith.cmpf oeq, %75, %78 : vector<9x128xf32>
    %c9_i32_41 = arith.constant 9 : i32
    %80 = vector.broadcast %c9_i32_41 : i32 to vector<9x128xi32>
    %81 = arith.select %79, %0, %80 : vector<9x128xi1>, vector<9x128xi32>
    %cst_42 = arith.constant dense<2147483647> : vector<128xi32>
    %82 = vector.multi_reduction <minsi>, %81, %cst_42 [0] : vector<9x128xi32> to vector<128xi32>
    %83 = vector.shape_cast %82 : vector<128xi32> to vector<1x128xi32>
    %84 = vector.broadcast %83 : vector<1x128xi32> to vector<9x128xi32>
    %85 = arith.cmpi eq, %0, %84 : vector<9x128xi32>
    %86 = vector.broadcast %77 : vector<1x128xf32> to vector<9x128xf32>
    %87 = vector.broadcast %64 : vector<9x1xf32> to vector<9x128xf32>
    %88 = arith.mulf %86, %87 : vector<9x128xf32>
    %89 = arith.subf %69, %88 : vector<9x128xf32>
    %90 = vector.shape_cast %77 : vector<1x128xf32> to vector<1x128xf32>
    %91 = vector.broadcast %90 : vector<1x128xf32> to vector<9x128xf32>
    %92 = arith.select %85, %91, %89 : vector<9x128xi1>, vector<9x128xf32>
    %c0_43 = arith.constant 0 : index
    %c0_44 = arith.constant 0 : index
    %93 = vector.load %arg10[%c0_43, %c0_44] : memref<9x128xf32, #tpu.memory_space<vmem>>, vector<9x128xf32>
    tpu.vector_store %arg10[%c0_43, %c0_44], %92 {strides = array<i32>} : memref<9x128xf32, #tpu.memory_space<vmem>>, vector<9x128xf32>,
    %c1_45 = arith.constant 1 : index
    %c0_46 = arith.constant 0 : index
    %c0_47 = arith.constant 0 : index
    %c0_48 = arith.constant 0 : index
    %94 = vector.load %arg8[%c1_45, %c0_46, %c0_47, %c0_48] : memref<3x9x8x128xf32, #tpu.memory_space<vmem>>, vector<1x9x8x128xf32>
    %95 = vector.shape_cast %94 : vector<1x9x8x128xf32> to vector<9x8x128xf32>
    %96 = vector.shape_cast %71 : vector<9x8x128xf32> to vector<1x9x8x128xf32>
    tpu.vector_store %arg8[%c1_45, %c0_46, %c0_47, %c0_48], %96 {strides = array<i32>} : memref<3x9x8x128xf32, #tpu.memory_space<vmem>>, vector<1x9x8x128xf32>,
    %97 = vector.shape_cast %64 : vector<9x1xf32> to vector<9x1x1xf32>
    %98 = vector.broadcast %97 : vector<9x1x1xf32> to vector<9x8x128xf32>
    %99 = arith.mulf %98, %71 : vector<9x8x128xf32>
    %cst_49 = arith.constant dense<0.000000e+00> : vector<8x128xf32>
    %100 = vector.multi_reduction <add>, %99, %cst_49 [0] : vector<9x8x128xf32> to vector<8x128xf32>
    %101 = vector.broadcast %64 : vector<9x1xf32> to vector<9x128xf32>
    %102 = arith.mulf %101, %70 : vector<9x128xf32>
    %cst_50 = arith.constant dense<0.000000e+00> : vector<128xf32>
    %103 = vector.multi_reduction <add>, %102, %cst_50 [0] : vector<9x128xf32> to vector<128xf32>
    %104 = vector.shape_cast %103 : vector<128xf32> to vector<1x128xf32>
    %105 = vector.broadcast %68 : f32 to vector<1x128xf32>
    %106 = arith.addf %104, %105 : vector<1x128xf32>
    %107 = vector.shape_cast %106 : vector<1x128xf32> to vector<1x128xf32>
    %108 = vector.broadcast %107 : vector<1x128xf32> to vector<9x128xf32>
    %109 = arith.select %85, %108, %70 : vector<9x128xi1>, vector<9x128xf32>
    %c0_51 = arith.constant 0 : index
    %c0_52 = arith.constant 0 : index
    %110 = vector.load %arg11[%c0_51, %c0_52] : memref<9x128xf32, #tpu.memory_space<vmem>>, vector<9x128xf32>
    tpu.vector_store %arg11[%c0_51, %c0_52], %109 {strides = array<i32>} : memref<9x128xf32, #tpu.memory_space<vmem>>, vector<9x128xf32>,
    %111 = vector.shape_cast %85 : vector<9x128xi1> to vector<9x1x128xi1>
    %112 = vector.shape_cast %100 : vector<8x128xf32> to vector<1x8x128xf32>
    %113 = vector.shape_cast %111 : vector<9x1x128xi1> to vector<9x1x128xi1>
    %114 = vector.broadcast %113 : vector<9x1x128xi1> to vector<9x8x128xi1>
    %115 = vector.shape_cast %112 : vector<1x8x128xf32> to vector<1x8x128xf32>
    %116 = vector.broadcast %115 : vector<1x8x128xf32> to vector<9x8x128xf32>
    %117 = arith.select %114, %116, %71 : vector<9x8x128xi1>, vector<9x8x128xf32>
    %c0_53 = arith.constant 0 : index
    %c0_54 = arith.constant 0 : index
    %c0_55 = arith.constant 0 : index
    %118 = vector.load %arg12[%c0_53, %c0_54, %c0_55] : memref<9x8x128xf32, #tpu.memory_space<vmem>>, vector<9x8x128xf32>
    tpu.vector_store %arg12[%c0_53, %c0_54, %c0_55], %117 {strides = array<i32>} : memref<9x8x128xf32, #tpu.memory_space<vmem>>, vector<9x8x128xf32>,
    %c1_56 = arith.constant 1 : index
    %c0_57 = arith.constant 0 : index
    %c0_58 = arith.constant 0 : index
    %119 = vector.load %arg9[%c1_56, %c0_57, %c0_58] : memref<3x8x128xf32, #tpu.memory_space<vmem>>, vector<1x8x128xf32>
    %120 = vector.shape_cast %119 : vector<1x8x128xf32> to vector<8x128xf32>
    %121 = vector.shape_cast %100 : vector<8x128xf32> to vector<1x8x128xf32>
    tpu.vector_store %arg9[%c1_56, %c0_57, %c0_58], %121 {strides = array<i32>} : memref<3x8x128xf32, #tpu.memory_space<vmem>>, vector<1x8x128xf32>,
    %c2 = arith.constant 2 : index
    %c0_59 = arith.constant 0 : index
    %c0_60 = arith.constant 0 : index
    %122 = vector.load %arg5[%c2, %c0_59, %c0_60] : memref<3x9x1xf32, #tpu.memory_space<vmem>>, vector<1x9x1xf32>
    %123 = vector.shape_cast %122 : vector<1x9x1xf32> to vector<9x1xf32>
    %c3_i32_61 = arith.constant 3 : i32
    %124 = arith.muli %arg1, %c3_i32_61 : i32
    %c2_i32 = arith.constant 2 : i32
    %125 = arith.addi %124, %c2_i32 : i32
    %126 = arith.index_cast %125 : i32 to index
    %127 = memref.load %arg2[%126] : memref<3xf32, #tpu.memory_space<smem>>
    %c0_62 = arith.constant 0 : index
    %c0_63 = arith.constant 0 : index
    %128 = vector.load %arg10[%c0_62, %c0_63] : memref<9x128xf32, #tpu.memory_space<vmem>>, vector<9x128xf32>
    %c0_64 = arith.constant 0 : index
    %c0_65 = arith.constant 0 : index
    %129 = vector.load %arg11[%c0_64, %c0_65] : memref<9x128xf32, #tpu.memory_space<vmem>>, vector<9x128xf32>
    %c0_66 = arith.constant 0 : index
    %c0_67 = arith.constant 0 : index
    %c0_68 = arith.constant 0 : index
    %130 = vector.load %arg12[%c0_66, %c0_67, %c0_68] : memref<9x8x128xf32, #tpu.memory_space<vmem>>, vector<9x8x128xf32>
    %cst_69 = arith.constant 9.99999968E-21 : f32
    %131 = vector.broadcast %cst_69 : f32 to vector<9x1xf32>
    %132 = arith.addf %123, %131 : vector<9x1xf32>
    %133 = vector.broadcast %132 : vector<9x1xf32> to vector<9x128xf32>
    %134 = arith.divf %128, %133 : vector<9x128xf32>
    %cst_70 = arith.constant dense<0x7F800000> : vector<128xf32>
    %135 = vector.multi_reduction <minimumf>, %134, %cst_70 [0] : vector<9x128xf32> to vector<128xf32>
    %136 = vector.shape_cast %135 : vector<128xf32> to vector<1x128xf32>
    %137 = vector.broadcast %136 : vector<1x128xf32> to vector<9x128xf32>
    %138 = arith.cmpf oeq, %134, %137 : vector<9x128xf32>
    %c9_i32_71 = arith.constant 9 : i32
    %139 = vector.broadcast %c9_i32_71 : i32 to vector<9x128xi32>
    %140 = arith.select %138, %0, %139 : vector<9x128xi1>, vector<9x128xi32>
    %cst_72 = arith.constant dense<2147483647> : vector<128xi32>
    %141 = vector.multi_reduction <minsi>, %140, %cst_72 [0] : vector<9x128xi32> to vector<128xi32>
    %142 = vector.shape_cast %141 : vector<128xi32> to vector<1x128xi32>
    %143 = vector.broadcast %142 : vector<1x128xi32> to vector<9x128xi32>
    %144 = arith.cmpi eq, %0, %143 : vector<9x128xi32>
    %145 = vector.broadcast %136 : vector<1x128xf32> to vector<9x128xf32>
    %146 = vector.broadcast %123 : vector<9x1xf32> to vector<9x128xf32>
    %147 = arith.mulf %145, %146 : vector<9x128xf32>
    %148 = arith.subf %128, %147 : vector<9x128xf32>
    %149 = vector.shape_cast %136 : vector<1x128xf32> to vector<1x128xf32>
    %150 = vector.broadcast %149 : vector<1x128xf32> to vector<9x128xf32>
    %151 = arith.select %144, %150, %148 : vector<9x128xi1>, vector<9x128xf32>
    %c0_73 = arith.constant 0 : index
    %c0_74 = arith.constant 0 : index
    %152 = vector.load %arg10[%c0_73, %c0_74] : memref<9x128xf32, #tpu.memory_space<vmem>>, vector<9x128xf32>
    tpu.vector_store %arg10[%c0_73, %c0_74], %151 {strides = array<i32>} : memref<9x128xf32, #tpu.memory_space<vmem>>, vector<9x128xf32>,
    %c2_75 = arith.constant 2 : index
    %c0_76 = arith.constant 0 : index
    %c0_77 = arith.constant 0 : index
    %c0_78 = arith.constant 0 : index
    %153 = vector.load %arg8[%c2_75, %c0_76, %c0_77, %c0_78] : memref<3x9x8x128xf32, #tpu.memory_space<vmem>>, vector<1x9x8x128xf32>
    %154 = vector.shape_cast %153 : vector<1x9x8x128xf32> to vector<9x8x128xf32>
    %155 = vector.shape_cast %130 : vector<9x8x128xf32> to vector<1x9x8x128xf32>
    tpu.vector_store %arg8[%c2_75, %c0_76, %c0_77, %c0_78], %155 {strides = array<i32>} : memref<3x9x8x128xf32, #tpu.memory_space<vmem>>, vector<1x9x8x128xf32>,
    %156 = vector.shape_cast %123 : vector<9x1xf32> to vector<9x1x1xf32>
    %157 = vector.broadcast %156 : vector<9x1x1xf32> to vector<9x8x128xf32>
    %158 = arith.mulf %157, %130 : vector<9x8x128xf32>
    %cst_79 = arith.constant dense<0.000000e+00> : vector<8x128xf32>
    %159 = vector.multi_reduction <add>, %158, %cst_79 [0] : vector<9x8x128xf32> to vector<8x128xf32>
    %160 = vector.broadcast %123 : vector<9x1xf32> to vector<9x128xf32>
    %161 = arith.mulf %160, %129 : vector<9x128xf32>
    %cst_80 = arith.constant dense<0.000000e+00> : vector<128xf32>
    %162 = vector.multi_reduction <add>, %161, %cst_80 [0] : vector<9x128xf32> to vector<128xf32>
    %163 = vector.shape_cast %162 : vector<128xf32> to vector<1x128xf32>
    %164 = vector.broadcast %127 : f32 to vector<1x128xf32>
    %165 = arith.addf %163, %164 : vector<1x128xf32>
    %166 = vector.shape_cast %165 : vector<1x128xf32> to vector<1x128xf32>
    %167 = vector.broadcast %166 : vector<1x128xf32> to vector<9x128xf32>
    %168 = arith.select %144, %167, %129 : vector<9x128xi1>, vector<9x128xf32>
    %c0_81 = arith.constant 0 : index
    %c0_82 = arith.constant 0 : index
    %169 = vector.load %arg11[%c0_81, %c0_82] : memref<9x128xf32, #tpu.memory_space<vmem>>, vector<9x128xf32>
    tpu.vector_store %arg11[%c0_81, %c0_82], %168 {strides = array<i32>} : memref<9x128xf32, #tpu.memory_space<vmem>>, vector<9x128xf32>,
    %170 = vector.shape_cast %144 : vector<9x128xi1> to vector<9x1x128xi1>
    %171 = vector.shape_cast %159 : vector<8x128xf32> to vector<1x8x128xf32>
    %172 = vector.shape_cast %170 : vector<9x1x128xi1> to vector<9x1x128xi1>
    %173 = vector.broadcast %172 : vector<9x1x128xi1> to vector<9x8x128xi1>
    %174 = vector.shape_cast %171 : vector<1x8x128xf32> to vector<1x8x128xf32>
    %175 = vector.broadcast %174 : vector<1x8x128xf32> to vector<9x8x128xf32>
    %176 = arith.select %173, %175, %130 : vector<9x8x128xi1>, vector<9x8x128xf32>
    %c0_83 = arith.constant 0 : index
    %c0_84 = arith.constant 0 : index
    %c0_85 = arith.constant 0 : index
    %177 = vector.load %arg12[%c0_83, %c0_84, %c0_85] : memref<9x8x128xf32, #tpu.memory_space<vmem>>, vector<9x8x128xf32>
    tpu.vector_store %arg12[%c0_83, %c0_84, %c0_85], %176 {strides = array<i32>} : memref<9x8x128xf32, #tpu.memory_space<vmem>>, vector<9x8x128xf32>,
    %c2_86 = arith.constant 2 : index
    %c0_87 = arith.constant 0 : index
    %c0_88 = arith.constant 0 : index
    %178 = vector.load %arg9[%c2_86, %c0_87, %c0_88] : memref<3x8x128xf32, #tpu.memory_space<vmem>>, vector<1x8x128xf32>
    %179 = vector.shape_cast %178 : vector<1x8x128xf32> to vector<8x128xf32>
    %180 = vector.shape_cast %159 : vector<8x128xf32> to vector<1x8x128xf32>
    tpu.vector_store %arg9[%c2_86, %c0_87, %c0_88], %180 {strides = array<i32>} : memref<3x8x128xf32, #tpu.memory_space<vmem>>, vector<1x8x128xf32>,
    %c0_i32_89 = arith.constant 0 : i32
    %181 = arith.cmpi eq, %arg1, %c0_i32_89 : i32
    %182 = arith.extui %181 : i1 to i32
    %c0_i32_90 = arith.constant 0 : i32
    %183 = arith.cmpi ne, %182, %c0_i32_90 : i32
    scf.if %183 {
      %c0_91 = arith.constant 0 : index
      %c0_92 = arith.constant 0 : index
      %184 = vector.load %arg10[%c0_91, %c0_92] : memref<9x128xf32, #tpu.memory_space<vmem>>, vector<9x128xf32>
      %c0_93 = arith.constant 0 : index
      %c0_94 = arith.constant 0 : index
      %185 = vector.load %arg11[%c0_93, %c0_94] : memref<9x128xf32, #tpu.memory_space<vmem>>, vector<9x128xf32>
      %186 = arith.mulf %184, %185 : vector<9x128xf32>
      %cst_95 = arith.constant dense<0.000000e+00> : vector<128xf32>
      %187 = vector.multi_reduction <add>, %186, %cst_95 [0] : vector<9x128xf32> to vector<128xf32>
      %188 = vector.shape_cast %187 : vector<128xf32> to vector<1x128xf32>
      %189 = arith.negf %188 : vector<1x128xf32>
      %190 = math.exp %189 : vector<1x128xf32>
      %cst_96 = arith.constant 1.000000e+00 : f32
      %191 = vector.broadcast %cst_96 : f32 to vector<1x128xf32>
      %192 = arith.addf %191, %190 : vector<1x128xf32>
      %193 = arith.divf %191, %192 : vector<1x128xf32>
      %c0_97 = arith.constant 0 : index
      %c0_98 = arith.constant 0 : index
      %194 = vector.load %arg7[%c0_97, %c0_98] : memref<1x128xf32, #tpu.memory_space<vmem>>, vector<1x128xf32>
      tpu.vector_store %arg7[%c0_97, %c0_98], %193 {strides = array<i32>} : memref<1x128xf32, #tpu.memory_space<vmem>>, vector<1x128xf32>,
    } else {
    }
    return
  }
  func.func @transform_0(%arg0: i32, %arg1: i32, %arg2: memref<3xf32, #tpu.memory_space<smem>>) -> (i32, i32) {
    %c0_i32 = arith.constant 0 : i32
    %c0_i32_0 = arith.constant 0 : i32
    return %c0_i32, %arg0 : i32, i32
  }
  func.func @transform_1(%arg0: i32, %arg1: i32, %arg2: memref<3xf32, #tpu.memory_space<smem>>) -> (i32, i32, i32) {
    %c0_i32 = arith.constant 0 : i32
    %c0_i32_0 = arith.constant 0 : i32
    %c0_i32_1 = arith.constant 0 : i32
    %c0_i32_2 = arith.constant 0 : i32
    return %c0_i32, %c0_i32_0, %c0_i32_1 : i32, i32, i32
  }
  func.func @transform_2(%arg0: i32, %arg1: i32, %arg2: memref<3xf32, #tpu.memory_space<smem>>) -> (i32, i32, i32) {
    %c0_i32 = arith.constant 0 : i32
    %c0_i32_0 = arith.constant 0 : i32
    %c0_i32_1 = arith.constant 0 : i32
    return %arg1, %c0_i32, %c0_i32_0 : i32, i32, i32
  }
  func.func @transform_3(%arg0: i32, %arg1: i32, %arg2: memref<3xf32, #tpu.memory_space<smem>>) -> (i32, i32) {
    %c0_i32 = arith.constant 0 : i32
    %c0_i32_0 = arith.constant 0 : i32
    %c0_i32_1 = arith.constant 0 : i32
    return %c0_i32, %c0_i32_0 : i32, i32
  }
  func.func @transform_4(%arg0: i32, %arg1: i32, %arg2: memref<3xf32, #tpu.memory_space<smem>>) -> (i32, i32) {
    %c0_i32 = arith.constant 0 : i32
    %c0_i32_0 = arith.constant 0 : i32
    return %c0_i32, %arg0 : i32, i32
  }
  func.func @transform_5(%arg0: i32, %arg1: i32, %arg2: memref<3xf32, #tpu.memory_space<smem>>) -> (i32, i32, i32, i32) {
    %c0_i32 = arith.constant 0 : i32
    %c0_i32_0 = arith.constant 0 : i32
    %c0_i32_1 = arith.constant 0 : i32
    return %arg1, %c0_i32, %c0_i32_0, %arg0 : i32, i32, i32, i32
  }
  func.func @transform_6(%arg0: i32, %arg1: i32, %arg2: memref<3xf32, #tpu.memory_space<smem>>) -> (i32, i32, i32) {
    %c0_i32 = arith.constant 0 : i32
    %c0_i32_0 = arith.constant 0 : i32
    return %arg1, %c0_i32, %arg0 : i32, i32, i32
  }
}

</mosaic_0001>

<bundles_post_ra>
// kernel: tpu_custom_call.1
= control target key start
LH: loop header
LB: loop body
LE: loop exit
PB: predicated region body
PF: predicated region fallthrough
CT: control target
= control target key end

     0   :  { %s2959_s0 = inlined_call_operand.vmem [shape: f32[3], index: 0, kind: input, shape index: {}]   ;;  %s2960_s1 = inlined_call_operand.vmem [shape: f32[9,256], index: 1, kind: input, shape index: {}]   ;;  %s2961_s2 = inlined_call_operand.vmem [shape: f32[9,8,1], index: 2, kind: input, shape index: {}]   ;;  %s2962_s3 = inlined_call_operand.vmem [shape: f32[3,9,1], index: 3, kind: input, shape index: {}]   ;;  %s2963_s4 = inlined_call_operand.vmem [shape: f32[9,1], index: 4, kind: input, shape index: {}]   ;;  %s2964_s5 = inlined_call_operand.hbm [shape: f32[1,256], index: 5, kind: output, shape index: {0}]   ;;  %s2965_s6 = inlined_call_operand.hbm [shape: f32[3,9,8,256], index: 6, kind: output, shape index: {1}]   ;;  %s2966_s7 = inlined_call_operand.hbm [shape: f32[3,8,256], index: 7, kind: output, shape index: {2}]  }
   0x1   :  { %s13_s26 = sshll.u32 %s2959_s0, 4  ;;  %s14_s26 = int_to_ptr.vmem [resolvable:$true] %s13_s26 }
   0x2   :  { %s2034_s27 = scalar_lea.vmem %s14_s26, 16  ;;  %p2039_p1 = scmp.lt.s32.totalorder %s14_s26, %s14_s26 }
   0x3   :  { %p2035_p0 = scmp.ne.s32.totalorder %s14_s26, %s2034_s27  ;;  %p2040_p2 = scmp.lt.s32.totalorder %s2034_s27, %s2034_s27 }
   0x5   :  { %p2041_p3 = por %p2040_p2, %p2039_p1 }
   0x7   :  { %p2042_p4 = pnand %p2041_p3, %p2035_p0 }
   0x9   :  { %2045 = shalt.err (!%p2042_p4)  }
   0xa   :  { %s2188_s28 = smov [#allocation6]  }
   0xb   :  { %16 = dma.vmem_to_smem %s14_s26, 16, %s2188_s28, [#allocation5] }
   0xc   :  { %2154 = dma.done.wait [#allocation5], 16 }
   0xd   :  { %2155 = vsyncadd [#allocation5], 4294967280 }
   0xe   :  { %18 = sfence }
   0xf   :  { %19 = vsyncpa [#allocation9], 0 }
  0x10   :  { %21 = vsyncpa [#allocation9 + $0x1], 0 }
  0x11   :  { %22 = vsyncpa [#allocation11], 0 }
  0x12   :  { %24 = vsyncpa [#allocation11 + $0x1], 0  ;;  %s2240_s29 = smov 0   ;;  %s2242_s0 = smov 0  }
  0x13   :  { %s2244_s30 = smov 0   ;;  %s2246_s8 = smov 0  }
  0x14   :  { %s2248_s9 = smov 0   ;;  %s2250_s10 = smov 0  }
  0x15 LB: > { %s1899_s11 = sadd.s32 4294967295, %s2186_s10   ;;  %s2967_s12 = sadd.s32 4294967294, %s2186_s10   ;;  %s2186_s10 = sphi %s2250_s10, %s30_s10   ;;  %s2182_s9 = sphi %s2248_s9, %s2983_s9   ;;  %s2178_s8 = sphi %s2246_s8, %s2982_s8   ;;  %s2174_s30 = sphi %s2244_s30, %s2981_s30   ;;  %s2170_s0 = sphi %s2242_s0, %s2980_s0   ;;  %s2166_s29 = sphi %s2240_s29, %s2979_s29  }
  0x16   : > { %s42_s13 = sadd.s32 1, %s2182_s9  ;;  %s49_s14 = sadd.s32 1, %s2174_s30 }
  0x17   : > { %p44_p5 = scmp.ge.s32.totalorder %s42_s13, 2  ;;  %p56_p6 = scmp.ne.s32.totalorder %s2174_s30, %s2170_s0 }
  0x18   : > { %p57_p7 = scmp.eq.s32.totalorder %s2186_s10, 0  ;;  %p154_p8 = scmp.eq.s32.totalorder %s1899_s11, 1 }
  0x19   : > { %s2985_s13 = smov (%p44_p5, %s42_s13), 0  ;;  %p159_p11 = scmp.ne.s32.totalorder %s2170_s0, %s2166_s29 }
  0x1a   : > { %p58_p9 = por %p57_p7, %p56_p6  ;;  %p2281_p10 = por %p154_p8, %p56_p6 }
  0x1b   : > { %s46_s16 = ssub.s32 %s2182_s9, %s2985_s13  ;;  %p160_p13 = scmp.eq.s32.totalorder %s2967_s12, 1 }
  0x1c   : > { %p47_p12 = scmp.eq.s32.totalorder %s46_s16, 0  ;;  %p1903_p1 = scmp.ge.s32.totalorder %s2186_s10, 2 }
  0x1d   : > { %p2294_p0 = por %p160_p13, %p159_p11 }
  0x1e   : > { %s2292_s17 = scalar_select %p47_p12, %s2174_s30, %s49_s14  }
  0x1f   : > { %248 = sbr.rel (%p1903_p1) target bundleno = 45 (0x2d), region = 28 }
  0x26   : > { %251 = sbr.rel (!%p58_p9) target bundleno = 45 (0x2d), region = 32  ;;  %s253_s19 = sand.u32 (%p58_p9), 1, %s2174_s30  }
  0x27   : > { %s1905_s20 = sshll.u32 (%p58_p9), %s2182_s9, 3  ;;  %s1904_s21 = sshll.u32 (%p58_p9), %s253_s19, 4 }
  0x28   : > { %s257_s24 = scalar_lea.vmem (%p58_p9), %s2960_s1, %s1905_s20  ;;  %s255_s25 = scalar_lea.vmem (%p58_p9), [#allocation7], %s1904_s21 }
  0x29   : > { %v287_v0 = vld [vmem:[%s257_s24] sm:$0xff] (%p58_p9)  ;;  %v289_v1 = vld [vmem:[%s257_s24 + $0x10] sm:$0xff] (%p58_p9) }
  0x2a   : > { %288 = vst [vmem:[%s255_s25] sm:$0xff] (%p58_p9), %v287_v0  ;;  %290 = vst [vmem:[%s255_s25 + $0x8] sm:$0xff] (%p58_p9), %v289_v1 }
  0x2d PF: > { %p1906_p2 = scmp.ge.s32.totalorder %s2186_s10, 1  ;;  %p295_p3 = scmp.lt.s32.totalorder %s2186_s10, 3 }
  0x2f   : > { %p296_p4 = pnand %p1906_p2, %p295_p3 }
  0x30   : > { %v2311_v2 = vld [vmem:[%s2962_s3 + $0x8] sm:$0x1] (!%p296_p4)  ;;  %v457_v3 = vld [vmem:[%s2962_s3] sm:$0xff] (!%p296_p4)  ;;  %v2189_v4 = vmov (!%p296_p4), 0   ;;  %v2323_v7 = vld [vmem:[%s2962_s3 + $0x10] sm:$0xff] (!%p296_p4)  ;;  %s2331_s22 = sand.u32 (!%p296_p4), 1, %s2170_s0   ;;  %v355_v16 = vlaneseq (!%p296_p4) }
  0x31   : > { %299 = sbr.rel (%p296_p4) target bundleno = 411 (0x19b), region = 70  ;;  %2014 = vset.pattern.permute.xlu1 (!%p296_p4), %v2189_v4  ;;  %2013 = vset.pattern.permute.xlu0 (!%p296_p4), %v2189_v4  ;;  %v475_v5 = vadd.f32 (!%p296_p4), 1e-20, %v2311_v2  ;;  %v474_v6 = vadd.f32 (!%p296_p4), 1e-20, %v457_v3  ;;  %s1907_s23 = sshll.u32 (!%p296_p4), %s2331_s22, 4  ;;  %v544_v35 = vcombine.high (!%p296_p4), %v457_v3, %v457_v3 }
  0x32   : > { %524 = vperm.xlu1 (!%p296_p4), %2014, %v2311_v2   ;;  %v2328_v8 = vld [vmem:[%s2962_s3 + $0x18] sm:$0x1] (!%p296_p4)  ;;  %v877_v9 = vadd.f32 (!%p296_p4), 1e-20, %v2323_v7  ;;  %s304_s24 = scalar_lea.vmem (!%p296_p4), [#allocation7], %s1907_s23  ;;  %v380_v12 = vld [vmem:[%s2963_s4] sm:$0xff] (!%p296_p4) }
  0x33   : > { %483 = vperm.xlu0 (!%p296_p4), %2013, %v475_v5   ;;  %v878_v10 = vadd.f32 (!%p296_p4), 1e-20, %v2328_v8  ;;  %v363_v11 = vld [vmem:[%s304_s24 + $0x8] sm:$0x1] (!%p296_p4)  ;;  %v2190_v14 = vmov (!%p296_p4), 1966171168  }
  0x34   : > { %379 = vst [vmem:[#allocation2 + $0x8] sm:$0x1] (!%p296_p4), %v363_v11  ;;  %v381_v13 = vld [vmem:[%s2963_s4 + $0x8] sm:$0x1] (!%p296_p4)  ;;  %v546_v15 = vunpack.c.l.s4 (!%p296_p4), %v2190_v14  ;;  %v394_v18 = vld [vmem:[%s2961_s2] sm:$0xff] (!%p296_p4)  ;;  %v2350_v20 = vshrl.u32 (!%p296_p4), %v355_v16, 7 }
  0x35   : > { %v2345_v17 = vld [vmem:[%s2962_s3 + $0x28] sm:$0x1] (!%p296_p4)  ;;  %vm366_vm0 = vcmask (!%p296_p4), 1040384   ;;  %v2357_v22 = vld [vmem:[%s2962_s3 + $0x20] sm:$0xff] (!%p296_p4)  ;;  %v397_v31 = vld [vmem:[%s2961_s2 + $0x18] sm:$0xff] (!%p296_p4)  ;;  %s1940_s14 = smul.u32 (!%p296_p4), 216, %s2331_s22 }
  0x36   : > { %519 = vperm.xlu1 (!%p296_p4), %2014, %v457_v3   ;;  %v547_v19 = vunpack.c.0.s8 (!%p296_p4), %v546_v15  ;;  %v1282_v21 = vadd.f32 (!%p296_p4), 1e-20, %v2345_v17  ;;  %v362_v23 = vld [vmem:[%s304_s24] sm:$0xff] (!%p296_p4)  ;;  %v367_v25 = vsel (!%p296_p4), %vm366_vm0, %v363_v11, 0.0  ;;  %v395_v26 = vld [vmem:[%s2961_s2 + $0x8] sm:$0xff] (!%p296_p4)  ;;  %v2379_v41 = vsub.s32 (!%p296_p4), 0, %v2350_v20 }
  0x37   : > { %478 = vperm.xlu0 (!%p296_p4), %2013, %v474_v6   ;;  %v1281_v27 = vadd.f32 (!%p296_p4), 1e-20, %v2357_v22  ;;  %v368_v28 = vadd.f32 (!%p296_p4), %v367_v25, %v362_v23  ;;  %v396_v33 = vld [vmem:[%s2961_s2 + $0x10] sm:$0xff] (!%p296_p4)  ;;  %v399_v42 = vld [vmem:[%s2961_s2 + $0x28] sm:$0xff] (!%p296_p4)  ;;  %v398_v45 = vld [vmem:[%s2961_s2 + $0x20] sm:$0xff] (!%p296_p4)  ;;  %vm364_vm1 = vcmp.eq.s32.totalorder (!%p296_p4), %v2350_v20, 0 }
  0x38   : > { %v2360_v24 = vsub.s32 %v547_v19, %v2350_v20  ;;  %v400_v0 = vld [vmem:[%s2961_s2 + $0x30] sm:$0xff]  ;;  %v401_v6 = vld [vmem:[%s2961_s2 + $0x38] sm:$0xff]  ;;  %s2475_s16 = scalar_lea.vmem [#allocation10], %s1940_s14  ;;  %s460_s19 = sld [smem:[#allocation6]] }
  0x39   : > { %v369_v29 = vrot.slane %v368_v28, 4  ;;  %s1941_s20 = smul.u32 24, %s2331_s22  ;;  %s1910_s23 = sld [smem:[#allocation6 + $0x1]] }
  0x3a   : > { %881 = vperm.xlu1 %2014, %v877_v9   ;;  %v551_v30 = vrot.slane %v457_v3, %v2360_v24  ;;  %v558_v39 = vrot.slane %v544_v35, %v2360_v24  ;;  %v599_v60 = vrot.slane %v2311_v2, %v2360_v24  ;;  %v954_v63 = vrot.slane %v2323_v7, %v2360_v24  ;;  %s2783_s25 = sand.u32 1, %s1899_s11   ;;  %s2968_s26 = sshll.u32 %s2178_s8, 7 }
  0x3b   : > { %886 = vperm.xlu0 %2013, %v878_v10   ;;  %v370_v32 = vadd.f32 %v369_v29, %v368_v28  ;;  %v947_v2 = vcombine.high %v2323_v7, %v2323_v7  ;;  %v1358_v28 = vrot.slane %v2357_v22, %v2360_v24  ;;  %s2625_s21 = scalar_lea.vmem [#allocation12], %s1941_s20  ;;  %s1729_s24 = sshll.u32 %s2475_s16, 4  ;;  %s2817_s24 = int_to_ptr.vmem [resolvable:$true] %s1729_s24 }
  0x3c   : > { %v559_v36 = vcombine.high %v551_v30, %v551_v30  ;;  %v567_v43 = vrot.slane %v551_v30, %v2360_v24  ;;  %v560_v49 = vcombine.high %v558_v39, %v558_v39  ;;  %v574_v55 = vrot.slane %v558_v39, %v2360_v24  ;;  %s2812_s28 = scalar_lea.hbm %s2965_s6, %s2968_s26  ;;  %s2819_s14 = sld [smem:[#allocation6 + $0x2]] }
  0x3d   : > { %v371_v34 = vrot.slane %v370_v32, 2  ;;  %v606_v3 = vrot.slane %v599_v60, %v2360_v24  ;;  %v962_v5 = vcombine.high %v954_v63, %v954_v63  ;;  %v961_v11 = vrot.slane %v947_v2, %v2360_v24  ;;  %s2046_s20 = scalar_lea.vmem %s2817_s24, 3456 }
  0x3e   : > { %384 = vperm.xlu1 %2014, %v380_v12   ;;  %v581_v40 = vrot.slane %v559_v36, %v2360_v24  ;;  %v610_v50 = vrot.slane %v567_v43, %v2379_v41  ;;  %v589_v51 = vcombine.high %v567_v43, %v567_v43  ;;  %v588_v54 = vrot.slane %v560_v49, %v2360_v24  ;;  %p2047_p5 = scmp.ne.s32.totalorder %s2817_s24, %s2046_s20 }
  0x3f   : > { %389 = vperm.xlu0 %2013, %v381_v13   ;;  %v372_v37 = vadd.f32 %v371_v34, %v370_v32  ;;  %v590_v58 = vcombine.high %v574_v55, %v574_v55  ;;  %v626_v59 = vrot.slane %v574_v55, %v2379_v41  ;;  %v642_v9 = vrot.slane %v606_v3, %v2379_v41  ;;  %v402_v13 = vld [vmem:[%s2961_s2 + $0x40] sm:$0xff] }
  0x40   : > { %v614_v47 = vrot.slane %v581_v40, %v2379_v41  ;;  %v591_v48 = vcombine.high %v581_v40, %v581_v40  ;;  %v618_v56 = vrot.slane %v589_v51, %v2379_v41  ;;  %v630_v57 = vrot.slane %v588_v54, %v2379_v41  ;;  %p2048_p6 = pnand %p2047_p5, %p2281_p10 }
  0x41   : > { %v373_v38 = vrot.slane %v372_v37, 1  ;;  %v634_v61 = vrot.slane %v590_v58, %v2379_v41  ;;  %v592_v62 = vcombine.high %v588_v54, %v588_v54  ;;  %v984_v10 = vrot.slane %v962_v5, %v2360_v24 }
  0x42   : > { %926 = vperm.xlu1 %2014, %v2328_v8   ;;  %v622_v53 = vrot.slane %v591_v48, %v2379_v41  ;;  %v970_v12 = vrot.slane %v954_v63, %v2360_v24  ;;  %v963_v15 = vcombine.high %v961_v11, %v961_v11  ;;  %v977_v25 = vrot.slane %v961_v11, %v2360_v24  ;;  %p2049_p7 = pneg %p2048_p6 }
  0x43   : > { %405 = vperm.xlu0 %2013, %v394_v18   ;;  %v374_v44 = vadd.f32 %v373_v38, %v372_v37  ;;  %v638_v1 = vrot.slane %v592_v62, %v2379_v41  ;;  %v994_v14 = vcombine.high %v984_v10, %v984_v10  ;;  %v1351_v34 = vcombine.high %v2357_v22, %v2357_v22 }
  0x44   : > { %v1013_v16 = vrot.slane %v970_v12, %v2379_v41  ;;  %v992_v18 = vcombine.high %v970_v12, %v970_v12  ;;  %v1029_v29 = vrot.slane %v977_v25, %v2379_v41  ;;  %v993_v30 = vcombine.high %v977_v25, %v977_v25 }
  0x45   : > { %v375_v46 = vsub.f32 1.0, %v374_v44  ;;  %v1025_v19 = vrot.slane %v994_v14, %v2379_v41  ;;  %v1366_v37 = vcombine.high %v1358_v28, %v1358_v28  ;;  %v1406_v49 = vrot.slane %v2345_v17, %v2360_v24 }
  0x46   : > { %1290 = vperm.xlu1 %2014, %v1282_v21   ;;  %v991_v21 = vrot.slane %v963_v15, %v2360_v24  ;;  %v1037_v35 = vrot.slane %v993_v30, %v2379_v41 }
  0x47   : > { %921 = vperm.xlu0 %2013, %v2323_v7   ;;  %v2392_v52 = vsel %vm364_vm1, %v375_v46, %v362_v23  ;;  %v1017_v7 = vrot.slane %v984_v10, %v2379_v41  ;;  %v1021_v23 = vrot.slane %v992_v18, %v2379_v41  ;;  %v1413_v54 = vrot.slane %v1406_v49, %v2360_v24 }
  0x4a   : > { %410 = vperm.xlu1 %2014, %v395_v26   ;;  %v1033_v26 = vrot.slane %v991_v21, %v2379_v41 }
  0x4b   : > { %1285 = vperm.xlu0 %2013, %v1281_v27   ;;  %v995_v27 = vcombine.high %v991_v21, %v991_v21 }
  0x4d   : > { %v1041_v32 = vrot.slane %v995_v27, %v2379_v41 }
  0x4e   : > { %420 = vperm.xlu1 %2014, %v397_v31   ;;  %v1002_v31 = vrot.slane %v2328_v8, %v2360_v24  ;;  %v1365_v8 = vrot.slane %v1351_v34, %v2360_v24 }
  0x4f   : > { %415 = vperm.xlu0 %2013, %v396_v33   ;;  %v1374_v33 = vrot.slane %v1358_v28, %v2360_v24 }
  0x50   : > { %v1009_v36 = vrot.slane %v1002_v31, %v2360_v24  ;;  %v1381_v43 = vrot.slane %v1365_v8, %v2360_v24  ;;  %v1367_v46 = vcombine.high %v1365_v8, %v1365_v8 }
  0x51   : > { %v1417_v38 = vrot.slane %v1374_v33, %v2379_v41  ;;  %v1396_v39 = vcombine.high %v1374_v33, %v1374_v33 }
  0x52   : > { %1325 = vperm.xlu1 %2014, %v2357_v22   ;;  %v1045_v40 = vrot.slane %v1009_v36, %v2379_v41  ;;  %v1397_v48 = vcombine.high %v1381_v43, %v1381_v43  ;;  %v1395_v51 = vrot.slane %v1367_v46, %v2360_v24 }
  0x53   : > { %1330 = vperm.xlu0 %2013, %v2345_v17   ;;  %v1425_v22 = vrot.slane %v1396_v39, %v2379_v41 }
  0x54   : > { %v1437_v55 = vrot.slane %v1395_v51, %v2379_v41 }
  0x56   : > { %430 = vperm.xlu1 %2014, %v399_v42   ;;  %v1388_v42 = vrot.slane %v1366_v37, %v2360_v24 }
  0x57   : > { %425 = vperm.xlu0 %2013, %v398_v45  }
  0x58   : > { %v1421_v44 = vrot.slane %v1388_v42, %v2379_v41  ;;  %v1398_v45 = vcombine.high %v1388_v42, %v1388_v42 }
  0x5a   : > { %648 = vperm.xlu1 %2014, %v614_v47   ;;  %v1433_v47 = vrot.slane %v1381_v43, %v2379_v41 }
  0x5b   : > { %644 = vperm.xlu0 %2013, %v610_v50   ;;  %v1429_v50 = vrot.slane %v1398_v45, %v2379_v41 }
  0x5e   : > { %656 = vperm.xlu1 %2014, %v622_v53   ;;  %v1441_v53 = vrot.slane %v1397_v48, %v2379_v41 }
  0x5f   : > { %652 = vperm.xlu0 %2013, %v618_v56   ;;  %v1399_v56 = vcombine.high %v1395_v51, %v1395_v51 }
  0x61   : > { %v1445_v17 = vrot.slane %v1399_v56, %v2379_v41 }
  0x62   : > { %664 = vperm.xlu1 %2014, %v630_v57   ;;  %v1449_v57 = vrot.slane %v1413_v54, %v2379_v41 }
  0x63   : > { %660 = vperm.xlu0 %2013, %v626_v59  }
  0x66   : > { %668 = vperm.xlu1 %2014, %v634_v61  }
  0x67   : > { %435 = vperm.xlu0 %2013, %v400_v0   ;;  %v2463_v0 = vld [vmem:[#allocation2 + $0x8] sm:$0x1] }
  0x6a   : > { %672 = vperm.xlu1 %2014, %v638_v1  }
  0x6b   : > { %440 = vperm.xlu0 %2013, %v401_v6  }
  0x6e   : > { %676 = vperm.xlu1 %2014, %v642_v9  }
  0x6f   : > { %445 = vperm.xlu0 %2013, %v402_v13  }
  0x72   : > { %1051 = vperm.xlu1 %2014, %v1017_v7  }
  0x73   : > { %1047 = vperm.xlu0 %2013, %v1013_v16  }
  0x76   : > { %1059 = vperm.xlu1 %2014, %v1025_v19  }
  0x77   : > { %1055 = vperm.xlu0 %2013, %v1021_v23  }
  0x7a   : > { %1067 = vperm.xlu1 %2014, %v1033_v26  }
  0x7b   : > { %1063 = vperm.xlu0 %2013, %v1029_v29  }
  0x7e   : > { %1075 = vperm.xlu1 %2014, %v1041_v32  }
  0x7f   : > { %1071 = vperm.xlu0 %2013, %v1037_v35   ;;  %v2503_v35 = vadd.s32 8, %v2350_v20 }
  0x82   : > { %1451 = vperm.xlu1 %2014, %v1417_v38  }
  0x83   : > { %1079 = vperm.xlu0 %2013, %v1045_v40  }
  0x86   : > { %1459 = vperm.xlu1 %2014, %v1425_v22  }
  0x87   : > { %1455 = vperm.xlu0 %2013, %v1421_v44  }
  0x8a   : > { %1467 = vperm.xlu1 %2014, %v1433_v47  }
  0x8b   : > { %1463 = vperm.xlu0 %2013, %v1429_v50  }
  0x8e   : > { %1475 = vperm.xlu1 %2014, %v1441_v53  }
  0x8f   : > { %1471 = vperm.xlu0 %2013, %v1437_v55  }
  0x92   : > { %1483 = vperm.xlu1 %2014, %v1449_v57  }
  0x93   : > { %1479 = vperm.xlu0 %2013, %v1445_v17  }
  0xb1   : > { %v2457_v58 = vpop.permute.xlu1 %524 }
  0xb2   : > { %v484_v59 = vpop.permute.xlu0 %483 }
  0xb3   : > { %2018 = vrcp.f32 %v484_v59 }
  0xb5   : > { %v2459_v60 = vpop.permute.xlu1 %519 }
  0xb6   : > { %v479_v61 = vpop.permute.xlu0 %478 }
  0xb7   : > { %2020 = vrcp.f32 %v479_v61 }
  0xb9   : > { %v882_v62 = vpop.permute.xlu1 %881 }
  0xba   : > { %v2461_v63 = vpop.permute.xlu0 %886  ;;  %2022 = vrcp.f32 %v882_v62 }
  0xbb   : > { %2024 = vrcp.f32 %v2461_v63 }
  0xbd   : > { %v2019_v1 = vpop.eup %2018  ;;  %v2466_v3 = vpop.permute.xlu1 %384 }
  0xbe   : > { %v390_v5 = vpop.permute.xlu0 %389  ;;  %v489_v2 = vmul.f32 %v2019_v1, %v2463_v0  ;;  %v696_v16 = vmul.f32 %v2459_v60, %v2466_v3  ;;  %v706_v1 = vstv %s460_s19 }
  0xbf   : > { %393 = vst [vmem:[#allocation3 + $0x8] sm:$0x1] %v390_v5 }
  0xc0   : > { %v491_v12 = vsel %vm366_vm0, %v489_v2, inf }
  0xc1   : > { %v2021_v6 = vpop.eup %2020  ;;  %v2469_v9 = vpop.permute.xlu1 %926 }
  0xc2   : > { %v487_v10 = vmul.f32 %v2021_v6, %v2392_v52  ;;  %v2472_v11 = vpop.permute.xlu0 %405 }
  0xc3   : > { %535 = vst [vmem:[%s2475_s16] sm:$0xff] %v2472_v11 }
  0xc4   : > { %v492_v13 = vmin.f32 %v487_v10, %v491_v12 }
  0xc5   : > { %v2479_v7 = vpop.permute.xlu1 %1290 }
  0xc6   : > { %v493_v14 = vrot.slane %v492_v13, 4  ;;  %v2481_v15 = vld [vmem:[#allocation3 + $0x8] sm:$0x1]  ;;  %v2485_v18 = vpop.permute.xlu0 %921 }
  0xc7   : > { %v697_v19 = vmul.f32 %v2457_v58, %v2481_v15 }
  0xc8   : > { %v494_v21 = vmin.f32 %v492_v13, %v493_v14 }
  0xc9   : > { %v698_v23 = vsel %vm366_vm0, %v697_v19, 0.0  ;;  %v2490_v25 = vpop.permute.xlu1 %410 }
  0xca   : > { %v495_v26 = vrot.slane %v494_v21, 2  ;;  %v699_v27 = vadd.f32 %v698_v23, %v696_v16  ;;  %536 = vst [vmem:[%s2475_s16 + $0x8] sm:$0xff] %v2490_v25  ;;  %v2494_v28 = vpop.permute.xlu0 %1285 }
  0xcb   : > { %2026 = vrcp.f32 %v2494_v28 }
  0xcc   : > { %v496_v29 = vmin.f32 %v494_v21, %v495_v26  ;;  %v700_v30 = vrot.slane %v699_v27, 4  ;;  %2028 = vrcp.f32 %v2479_v7 }
  0xcd   : > { %v2496_v31 = vpop.permute.xlu1 %420 }
  0xce   : > { %v497_v32 = vrot.slane %v496_v29, 1  ;;  %v701_v33 = vadd.f32 %v700_v30, %v699_v27  ;;  %538 = vst [vmem:[%s2475_s16 + $0x18] sm:$0xff] %v2496_v31  ;;  %v2500_v34 = vpop.permute.xlu0 %415 }
  0xcf   : > { %537 = vst [vmem:[%s2475_s16 + $0x10] sm:$0xff] %v2500_v34 }
  0xd0   : > { %v498_v36 = vmin.f32 %v496_v29, %v497_v32  ;;  %v702_v38 = vrot.slane %v701_v33, 2 }
  0xd1   : > { %v2507_v37 = vpop.permute.xlu1 %1325 }
  0xd2   : > { %vm499_vm2 = vcmp.eq.f32.partialorder %v487_v10, %v498_v36  ;;  %vm500_vm3 = vcmp.eq.f32.partialorder %v489_v2, %v498_v36  ;;  %v2509_v39 = vpop.permute.xlu0 %1330  ;;  %v703_v44 = vadd.f32 %v702_v38, %v701_v33  ;;  %v527_v57 = vmul.f32 %v2459_v60, %v498_v36 }
  0xd3   : > { %v501_v8 = vsel %vm499_vm2, %v2350_v20, 9  ;;  %v502_v40 = vsel %vm500_vm3, %v2503_v35, 9  ;;  %v528_v17 = vmul.f32 %v2457_v58, %v498_v36 }
  0xd4   : > { %v503_v42 = vsel %vm366_vm0, %v502_v40, 2147483647  ;;  %v704_v49 = vrot.slane %v703_v44, 1  ;;  %v529_v14 = vsub.f32 %v2392_v52, %v527_v57  ;;  %v2023_v52 = vpop.eup %2022 }
  0xd5   : > { %vm504_vm4 = vcmp.lt.s32.totalorder %v501_v8, %v503_v42  ;;  %v2514_v22 = vpop.permute.xlu1 %430  ;;  %v530_v60 = vsub.f32 %v2463_v0, %v528_v17 }
  0xd6   : > { %v505_v43 = vsel %vm504_vm4, %v501_v8, %v503_v42  ;;  %540 = vst [vmem:[%s2475_s16 + $0x28] sm:$0xff] %v2514_v22  ;;  %v2518_v45 = vpop.permute.xlu0 %425  ;;  %v705_v59 = vadd.f32 %v704_v49, %v703_v44 }
  0xd7   : > { %v506_v46 = vrot.slane %v505_v43, 4  ;;  %539 = vst [vmem:[%s2475_s16 + $0x20] sm:$0xff] %v2518_v45 }
  0xd8   : > { %v707_v58 = vadd.f32 %v706_v1, %v705_v59 }
  0xd9   : > { %vm507_vm5 = vcmp.lt.s32.totalorder %v505_v43, %v506_v46  ;;  %v649_v47 = vpop.permute.xlu1 %648 }
  0xda   : > { %v508_v48 = vsel %vm507_vm5, %v505_v43, %v506_v46  ;;  %v645_v50 = vpop.permute.xlu0 %644  ;;  %v680_v53 = vmul.f32 %v649_v47, %v2490_v25 }
  0xdb   : > { %v509_v51 = vrot.slane %v508_v48, 2  ;;  %v679_v54 = vmul.f32 %v645_v50, %v2472_v11 }
  0xdd   : > { %vm510_vm6 = vcmp.lt.s32.totalorder %v508_v48, %v509_v51  ;;  %v657_v55 = vpop.permute.xlu1 %656  ;;  %v688_v2 = vadd.f32 %v680_v53, %v679_v54 }
  0xde   : > { %v511_v56 = vsel %vm510_vm6, %v508_v48, %v509_v51  ;;  %v653_v61 = vpop.permute.xlu0 %652  ;;  %v682_v62 = vmul.f32 %v657_v55, %v2496_v31 }
  0xdf   : > { %v512_v5 = vrot.slane %v511_v56, 1  ;;  %v681_v6 = vmul.f32 %v653_v61, %v2500_v34 }
  0xe1   : > { %vm513_vm7 = vcmp.lt.s32.totalorder %v511_v56, %v512_v5  ;;  %v689_v10 = vadd.f32 %v688_v2, %v681_v6  ;;  %v665_v12 = vpop.permute.xlu1 %664 }
  0xe2   : > { %v514_v13 = vsel %vm513_vm7, %v511_v56, %v512_v5  ;;  %v661_v16 = vpop.permute.xlu0 %660  ;;  %v2025_v56 = vpop.eup %2024 }
  0xe3   : > { %vm515_vm8 = vcmp.eq.s32.totalorder %v2350_v20, %v514_v13  ;;  %vm516_vm9 = vcmp.eq.s32.totalorder %v2503_v35, %v514_v13  ;;  %v683_v19 = vmul.f32 %v661_v16, %v2518_v45  ;;  %v690_v21 = vadd.f32 %v689_v10, %v682_v62  ;;  %v2027_v28 = vpop.eup %2026 }
  0xe4   : > { %v532_v63 = vsel %vm516_vm9, %v498_v36, %v530_v60  ;;  %v709_v23 = vsel %vm516_vm9, %v707_v58, %v2481_v15  ;;  %v712_v26 = vsel %vm515_vm8, 1, %v2189_v4  ;;  %v2540_v0 = vsel %vm515_vm8, %v498_v36, %v529_v14 }
  0xe5   : > { %534 = vst [vmem:[#allocation2 + $0x8] sm:$0x1] %v532_v63  ;;  %711 = vst [vmem:[#allocation3 + $0x8] sm:$0x1] %v709_v23  ;;  %v714_v27 = vcombine.high %v712_v26, %v712_v26  ;;  %v721_v29 = vrot.slane %v712_v26, %v2360_v24  ;;  %v669_v30 = vpop.permute.xlu1 %668  ;;  %v2544_v32 = vsel %vm516_vm9, 1, %v2189_v4  ;;  %v684_v15 = vmul.f32 %v665_v12, %v2514_v22 }
  0xe6   : > { %v691_v33 = vadd.f32 %v690_v21, %v683_v19  ;;  %v2547_v38 = vpop.permute.xlu0 %435  ;;  %v2552_v8 = vsel %vm515_vm8, %v707_v58, %v2466_v3  ;;  %v2559_v43 = vmul.f32 %v2023_v52, %v2540_v0  ;;  %v769_v49 = vrot.slane %v2544_v32, %v2360_v24 }
  0xe7   : > { %541 = vst [vmem:[%s2475_s16 + $0x30] sm:$0xff] %v2547_v38  ;;  %v685_v36 = vmul.f32 %v669_v30, %v2547_v38  ;;  %v729_v40 = vcombine.high %v721_v29, %v721_v29  ;;  %v737_v42 = vrot.slane %v721_v29, %v2360_v24  ;;  %v728_v46 = vrot.slane %v714_v27, %v2360_v24 }
  0xe8   : > { %v692_v44 = vadd.f32 %v691_v33, %v684_v15  ;;  %v1099_v50 = vmul.f32 %v2485_v18, %v2552_v8 }
  0xe9   : > { %v673_v47 = vpop.permute.xlu1 %672  ;;  %v751_v48 = vrot.slane %v729_v40, %v2360_v24  ;;  %vm777_vm10 = vcmp.ne.s32.totalorder %v737_v42, 0  ;;  %v759_v3 = vcombine.high %v737_v42, %v737_v42  ;;  %v730_v55 = vcombine.high %v728_v46, %v728_v46 }
  0xea   : > { %v693_v51 = vadd.f32 %v692_v44, %v685_v36  ;;  %v2567_v53 = vpop.permute.xlu0 %440  ;;  %v786_v54 = vsel %vm777_vm10, 1, %v2189_v4  ;;  %v744_v6 = vrot.slane %v728_v46, %v2360_v24 }
  0xeb   : > { %542 = vst [vmem:[%s2475_s16 + $0x38] sm:$0xff] %v2567_v53  ;;  %v686_v57 = vmul.f32 %v673_v47, %v2567_v53  ;;  %vm778_vm11 = vcmp.ne.s32.totalorder %v751_v48, 0  ;;  %v798_v17 = vrot.slane %v786_v54, %v2379_v41  ;;  %v761_v59 = vcombine.high %v751_v48, %v751_v48 }
  0xec   : > { %v2575_v61 = vld [vmem:[#allocation2 + $0x8] sm:$0x1]  ;;  %v2577_v1 = vld [vmem:[#allocation3 + $0x8] sm:$0x1]  ;;  %v787_v5 = vsel %vm778_vm11, 1, %v2189_v4  ;;  %vm779_vm12 = vcmp.ne.s32.totalorder %v759_v3, 0  ;;  %v758_v2 = vrot.slane %v730_v55, %v2360_v24 }
  0xed   : > { %v2583_v62 = vmul.f32 %v2025_v56, %v2575_v61  ;;  %v1100_v10 = vmul.f32 %v2469_v9, %v2577_v1  ;;  %v694_v12 = vadd.f32 %v693_v51, %v686_v57  ;;  %v677_v13 = vpop.permute.xlu1 %676  ;;  %v802_v14 = vrot.slane %v787_v5, %v2379_v41 }
  0xee   : > { %v2588_v60 = vpop.permute.xlu0 %445  ;;  %vm2590_vm13 = vcmp.eq.s32.totalorder %v798_v17, 1  ;;  %vm780_vm14 = vcmp.ne.s32.totalorder %v761_v59, 0  ;;  %v788_v16 = vsel %vm779_vm12, 1, %v2189_v4  ;;  %vm782_vm15 = vcmp.ne.s32.totalorder %v758_v2, 0 }
  0xef   : > { %v893_v19 = vsel %vm366_vm0, %v2583_v62, inf  ;;  %v1101_v21 = vsel %vm366_vm0, %v1100_v10, 0.0  ;;  %543 = vst [vmem:[%s2475_s16 + $0x40] sm:$0xff] %v2588_v60  ;;  %v687_v63 = vmul.f32 %v677_v13, %v2588_v60  ;;  %vm832_vm1 = vcmp.eq.s32.totalorder %v802_v14, 1 }
  0xf0   : > { %v894_v23 = vmin.f32 %v2559_v43, %v893_v19  ;;  %v1102_v26 = vadd.f32 %v1101_v21, %v1099_v50  ;;  %v789_v52 = vsel %vm780_vm14, 1, %v2189_v4  ;;  %v806_v27 = vrot.slane %v788_v16, %v2379_v41 }
  0xf1   : > { %v2604_v29 = vadd.f32 %v694_v12, %v687_v63  ;;  %v1052_v30 = vpop.permute.xlu1 %1051  ;;  %v810_v15 = vrot.slane %v789_v52, %v2379_v41  ;;  %v791_v33 = vsel %vm782_vm15, 1, %v2189_v4  ;;  %vm781_vm2 = vcmp.ne.s32.totalorder %v744_v6, 0 }
  0xf2   : > { %v895_v36 = vrot.slane %v894_v23, 4  ;;  %v1103_v40 = vrot.slane %v1102_v26, 4  ;;  %v1048_v42 = vpop.permute.xlu0 %1047  ;;  %vm833_vm3 = vcmp.eq.s32.totalorder %v806_v27, 1  ;;  %v818_v44 = vrot.slane %v791_v33, %v2379_v41 }
  0xf3   : > { %v2611_v46 = vsel %vm832_vm1, %v2604_v29, %v2490_v25  ;;  %v2617_v47 = vsel %vm2590_vm13, %v2604_v29, %v2472_v11  ;;  %vm834_vm4 = vcmp.eq.s32.totalorder %v810_v15, 1  ;;  %v2621_v48 = vsel %vm833_vm3, %v2604_v29, %v2500_v34  ;;  %858 = vst [vmem:[%s2625_s21] sm:$0xff] %v2604_v29 }
  0xf4   : > { %v896_v25 = vmin.f32 %v894_v23, %v895_v36  ;;  %1912 = vst [vmem:[%s2475_s16 + $0x50] sm:$0xff] %v2611_v46  ;;  %v1083_v3 = vmul.f32 %v1052_v30, %v2611_v46  ;;  %1911 = vst [vmem:[%s2475_s16 + $0x48] sm:$0xff] %v2617_v47  ;;  %v1082_v11 = vmul.f32 %v1048_v42, %v2617_v47  ;;  %vm836_vm5 = vcmp.eq.s32.totalorder %v818_v44, 1 }
  0xf5   : > { %1913 = vst [vmem:[%s2475_s16 + $0x58] sm:$0xff] %v2621_v48  ;;  %v760_v34 = vcombine.high %v744_v6, %v744_v6  ;;  %v1060_v50 = vpop.permute.xlu1 %1059  ;;  %v2639_v51 = vsel %vm834_vm4, %v2604_v29, %v2496_v31  ;;  %v790_v54 = vsel %vm781_vm2, 1, %v2189_v4  ;;  %v762_v55 = vcombine.high %v758_v2, %v758_v2 }
  0xf6   : > { %v897_v56 = vrot.slane %v896_v25, 2  ;;  %v1104_v57 = vadd.f32 %v1103_v40, %v1102_v26  ;;  %v1091_v17 = vadd.f32 %v1083_v3, %v1082_v11  ;;  %1914 = vst [vmem:[%s2475_s16 + $0x60] sm:$0xff] %v2639_v51  ;;  %v1056_v59 = vpop.permute.xlu0 %1055  ;;  %v776_v5 = vrot.slane %v769_v49, %v2360_v24 }
  0xf7   : > { %v1084_v31 = vmul.f32 %v1056_v59, %v2621_v48  ;;  %v2652_v10 = vsel %vm836_vm5, %v2604_v29, %v2514_v22  ;;  %v814_v2 = vrot.slane %v790_v54, %v2379_v41  ;;  %vm784_vm6 = vcmp.ne.s32.totalorder %v762_v55, 0 }
  0xf8   : > { %v898_v6 = vmin.f32 %v896_v25, %v897_v56  ;;  %v1085_v12 = vmul.f32 %v1060_v50, %v2639_v51  ;;  %1916 = vst [vmem:[%s2475_s16 + $0x70] sm:$0xff] %v2652_v10  ;;  %v793_v13 = vsel %vm784_vm6, 1, %v2189_v4  ;;  %vm783_vm7 = vcmp.ne.s32.totalorder %v760_v34, 0 }
  0xf9   : > { %v1092_v32 = vadd.f32 %v1091_v17, %v1084_v31  ;;  %vm835_vm8 = vcmp.eq.s32.totalorder %v814_v2, 1  ;;  %v826_v49 = vrot.slane %v793_v13, %v2379_v41  ;;  %v792_v22 = vsel %vm783_vm7, 1, %v2189_v4  ;;  %v1068_v58 = vpop.permute.xlu1 %1067 }
  0xfa   : > { %v899_v14 = vrot.slane %v898_v6, 1  ;;  %v1064_v16 = vpop.permute.xlu0 %1063  ;;  %v2663_v19 = vsel %vm835_vm8, %v2604_v29, %v2518_v45  ;;  %v822_v23 = vrot.slane %v792_v22, %v2379_v41  ;;  %vm785_vm10 = vcmp.ne.s32.totalorder %v776_v5, 0 }
  0xfb   : > { %1915 = vst [vmem:[%s2475_s16 + $0x68] sm:$0xff] %v2663_v19  ;;  %v1086_v21 = vmul.f32 %v1064_v16, %v2663_v19  ;;  %v1093_v63 = vadd.f32 %v1092_v32, %v1085_v12  ;;  %vm838_vm9 = vcmp.eq.s32.totalorder %v826_v49, 1  ;;  %v1105_v27 = vrot.slane %v1104_v57, 2 }
  0xfc   : > { %v900_v26 = vmin.f32 %v898_v6, %v899_v14  ;;  %v2671_v52 = vsel %vm838_vm9, %v2604_v29, %v2567_v53  ;;  %vm837_vm11 = vcmp.eq.s32.totalorder %v822_v23, 1  ;;  %v794_v45 = vsel %vm785_vm10, 1, %v2189_v4 }
  0xfd   : > { %v1094_v30 = vadd.f32 %v1093_v63, %v1086_v21  ;;  %1918 = vst [vmem:[%s2475_s16 + $0x80] sm:$0xff] %v2671_v52  ;;  %v1087_v42 = vmul.f32 %v1068_v58, %v2652_v10  ;;  %v1076_v3 = vpop.permute.xlu1 %1075  ;;  %v1106_v34 = vadd.f32 %v1105_v27, %v1104_v57 }
  0xfe   : > { %vm901_vm12 = vcmp.eq.f32.partialorder %v2559_v43, %v900_v26  ;;  %vm902_vm13 = vcmp.eq.f32.partialorder %v2583_v62, %v900_v26  ;;  %v930_v15 = vmul.f32 %v2469_v9, %v900_v26  ;;  %v929_v33 = vmul.f32 %v2485_v18, %v900_v26  ;;  %v1072_v36 = vpop.permute.xlu0 %1071 }
  0xff   : > { %v903_v53 = vsel %vm901_vm12, %v2350_v20, 9  ;;  %v904_v40 = vsel %vm902_vm13, %v2503_v35, 9  ;;  %v2687_v43 = vsel %vm837_vm11, %v2604_v29, %v2547_v38  ;;  %v1095_v18 = vadd.f32 %v1094_v30, %v1087_v42 }
 0x100   : > { %v905_v44 = vsel %vm366_vm0, %v904_v40, 2147483647  ;;  %v931_v25 = vsub.f32 %v2540_v0, %v929_v33  ;;  %1917 = vst [vmem:[%s2475_s16 + $0x78] sm:$0xff] %v2687_v43  ;;  %v1088_v9 = vmul.f32 %v1072_v36, %v2687_v43  ;;  %v830_v62 = vrot.slane %v794_v45, %v2379_v41  ;;  %v2029_v40 = vpop.eup %2028 }
 0x101   : > { %vm906_vm14 = vcmp.lt.s32.totalorder %v903_v53, %v905_v44  ;;  %v1089_v0 = vmul.f32 %v1076_v3, %v2671_v52  ;;  %v1107_v57 = vrot.slane %v1106_v34, 1  ;;  %v932_v13 = vsub.f32 %v2575_v61, %v930_v15 }
 0x102   : > { %v907_v11 = vsel %vm906_vm14, %v903_v53, %v905_v44  ;;  %v1080_v50 = vpop.permute.xlu0 %1079  ;;  %v1096_v55 = vadd.f32 %v1095_v18, %v1088_v9  ;;  %vm839_vm15 = vcmp.eq.s32.totalorder %v830_v62, 1  ;;  %v1452_v62 = vpop.permute.xlu1 %1451 }
 0x103   : > { %v908_v54 = vrot.slane %v907_v11, 4  ;;  %v2696_v38 = vsel %vm839_vm15, %v2604_v29, %v2588_v60  ;;  %v1108_v6 = vadd.f32 %v1107_v57, %v1106_v34  ;;  %v1109_v29 = vstv %s1910_s23  ;;  %s2191_s23 = smov [#allocation10]  }
 0x104   : > { %1919 = vst [vmem:[%s2475_s16 + $0x88] sm:$0xff] %v2696_v38  ;;  %v1090_v56 = vmul.f32 %v1080_v50, %v2696_v38  ;;  %v1097_v17 = vadd.f32 %v1096_v55, %v1089_v0  ;;  %s2050_s11 = sshll.u32 %s2191_s23, 4  ;;  %s2051_s11 = int_to_ptr.vmem [resolvable:$false] %s2050_s11 }
 0x105   : > { %vm909_vm1 = vcmp.lt.s32.totalorder %v907_v11, %v908_v54  ;;  %v1110_v32 = vadd.f32 %v1109_v29, %v1108_v6  ;;  %s2052_s27 = scalar_lea.vmem %s2051_s11, 6912  ;;  %p2053_p8 = scmp.lt.s32.totalorder %s2817_s24, %s2051_s11 }
 0x106   : > { %v910_v59 = vsel %vm909_vm1, %v907_v11, %v908_v54  ;;  %v2702_v31 = vadd.f32 %v1097_v17, %v1090_v56  ;;  %p2054_p9 = scmp.lt.s32.totalorder %s2052_s27, %s2046_s20 }
 0x107   : > { %v911_v5 = vrot.slane %v910_v59, 2 }
 0x108   : > { %1920 = vst [vmem:[%s2625_s21 + $0x8] sm:$0xff] %v2702_v31  ;;  %p2055_p11 = por %p2054_p9, %p2053_p8 }
 0x109   : > { %vm912_vm2 = vcmp.lt.s32.totalorder %v910_v59, %v911_v5 }
 0x10a   : > { %v913_v2 = vsel %vm912_vm2, %v910_v59, %v911_v5  ;;  %p2056_p12 = pnand %p2055_p11, %p2049_p7 }
 0x10b   : > { %v914_v60 = vrot.slane %v913_v2, 1 }
 0x10d   : > { %vm915_vm3 = vcmp.lt.s32.totalorder %v913_v2, %v914_v60 }
 0x10e   : > { %v916_v12 = vsel %vm915_vm3, %v913_v2, %v914_v60  ;;  %v1456_v2 = vpop.permute.xlu0 %1455 }
 0x10f   : > { %vm918_vm4 = vcmp.eq.s32.totalorder %v2503_v35, %v916_v12  ;;  %vm917_vm5 = vcmp.eq.s32.totalorder %v2350_v20, %v916_v12 }
 0x110   : > { %v934_v49 = vsel %vm918_vm4, %v900_v26, %v932_v13  ;;  %v2710_v22 = vsel %vm917_vm5, %v900_v26, %v931_v25  ;;  %v1112_v14 = vsel %vm918_vm4, %v1110_v32, %v2577_v1  ;;  %v1115_v58 = vsel %vm917_vm5, 1, %v2189_v4 }
 0x111   : > { %936 = vst [vmem:[#allocation2 + $0x8] sm:$0x1] %v934_v49  ;;  %1114 = vst [vmem:[#allocation3 + $0x8] sm:$0x1] %v1112_v14  ;;  %v2715_v16 = vmul.f32 %v2027_v28, %v2710_v22  ;;  %v1116_v7 = vsel %vm918_vm4, 1, %v2189_v4  ;;  %v1117_v61 = vcombine.high %v1115_v58, %v1115_v58  ;;  %v1124_v21 = vrot.slane %v1115_v58, %v2360_v24 }
 0x112   : > { %v1172_v63 = vrot.slane %v1116_v7, %v2360_v24  ;;  %v2721_v23 = vsel %vm917_vm5, %v1110_v32, %v2552_v8  ;;  %v1460_v32 = vpop.permute.xlu1 %1459 }
 0x113   : > { %v1140_v26 = vrot.slane %v1124_v21, %v2360_v24  ;;  %v1132_v1 = vcombine.high %v1124_v21, %v1124_v21  ;;  %v1131_v27 = vrot.slane %v1117_v61, %v2360_v24  ;;  %v1503_v33 = vmul.f32 %v2507_v37, %v2721_v23 }
 0x114   : > { %v1179_v8 = vrot.slane %v1172_v63, %v2360_v24 }
 0x115   : > { %v1162_v30 = vcombine.high %v1140_v26, %v1140_v26  ;;  %v1154_v45 = vrot.slane %v1132_v1, %v2360_v24  ;;  %vm1180_vm6 = vcmp.ne.s32.totalorder %v1140_v26, 0  ;;  %v1147_v15 = vrot.slane %v1131_v27, %v2360_v24  ;;  %v1464_v26 = vpop.permute.xlu0 %1463 }
 0x116   : > { %v1189_v36 = vsel %vm1180_vm6, 1, %v2189_v4  ;;  %v1133_v53 = vcombine.high %v1131_v27, %v1131_v27  ;;  %vm1188_vm15 = vcmp.ne.s32.totalorder %v1179_v8, 0 }
 0x117   : > { %vm1182_vm7 = vcmp.ne.s32.totalorder %v1162_v30, 0  ;;  %vm1181_vm8 = vcmp.ne.s32.totalorder %v1154_v45, 0  ;;  %v1201_v25 = vrot.slane %v1189_v36, %v2379_v41  ;;  %v1164_v3 = vcombine.high %v1154_v45, %v1154_v45 }
 0x118   : > { %v2731_v42 = vld [vmem:[#allocation2 + $0x8] sm:$0x1]  ;;  %v2733_v44 = vld [vmem:[#allocation3 + $0x8] sm:$0x1]  ;;  %v1191_v11 = vsel %vm1182_vm7, 1, %v2189_v4  ;;  %v1190_v34 = vsel %vm1181_vm8, 1, %v2189_v4  ;;  %v1163_v28 = vcombine.high %v1147_v15, %v1147_v15  ;;  %v1161_v49 = vrot.slane %v1133_v53, %v2360_v24 }
 0x119   : > { %v2737_v9 = vmul.f32 %v2029_v40, %v2731_v42  ;;  %v1504_v18 = vmul.f32 %v2509_v39, %v2733_v44  ;;  %v1209_v50 = vrot.slane %v1191_v11, %v2379_v41  ;;  %v1205_v54 = vrot.slane %v1190_v34, %v2379_v41  ;;  %v1472_v34 = vpop.permute.xlu0 %1471 }
 0x11a   : > { %vm1234_vm9 = vcmp.eq.s32.totalorder %v1201_v25, 1  ;;  %vm1184_vm10 = vcmp.ne.s32.totalorder %v1147_v15, 0  ;;  %vm1183_vm14 = vcmp.ne.s32.totalorder %v1164_v3, 0  ;;  %vm1186_vm1 = vcmp.ne.s32.totalorder %v1163_v28, 0 }
 0x11b   : > { %v1297_v0 = vsel %vm366_vm0, %v2737_v9, inf  ;;  %v1505_v55 = vsel %vm366_vm0, %v1504_v18, 0.0  ;;  %v1243_v56 = vsel %vm1234_vm9, %v2702_v31, %v2617_v47  ;;  %v1193_v17 = vsel %vm1184_vm10, 1, %v2189_v4 }
 0x11c   : > { %v1298_v59 = vmin.f32 %v2715_v16, %v1297_v0  ;;  %v1506_v57 = vadd.f32 %v1505_v55, %v1503_v33  ;;  %vm1236_vm11 = vcmp.eq.s32.totalorder %v1209_v50, 1  ;;  %vm1235_vm12 = vcmp.eq.s32.totalorder %v1205_v54, 1  ;;  %1924 = vst [vmem:[%s2475_s16 + $0x90] sm:$0xff] %v1243_v56  ;;  %v1468_v33 = vpop.permute.xlu1 %1467 }
 0x11d   : > { %v1245_v5 = vsel %vm1236_vm11, %v2702_v31, %v2621_v48  ;;  %v1244_v6 = vsel %vm1235_vm12, %v2702_v31, %v2611_v46  ;;  %v1217_v60 = vrot.slane %v1193_v17, %v2379_v41  ;;  %v1486_v12 = vmul.f32 %v1452_v62, %v1243_v56 }
 0x11e   : > { %v1299_v29 = vrot.slane %v1298_v59, 4  ;;  %v1507_v47 = vrot.slane %v1506_v57, 4  ;;  %1926 = vst [vmem:[%s2475_s16 + $0xa0] sm:$0xff] %v1245_v5  ;;  %1925 = vst [vmem:[%s2475_s16 + $0x98] sm:$0xff] %v1244_v6  ;;  %v1487_v13 = vmul.f32 %v1456_v2, %v1244_v6  ;;  %v1192_v58 = vsel %vm1183_vm14, 1, %v2189_v4  ;;  %v1480_v6 = vpop.permute.xlu0 %1479 }
 0x11f   : > { %vm1238_vm13 = vcmp.eq.s32.totalorder %v1217_v60, 1  ;;  %vm1185_vm2 = vcmp.ne.s32.totalorder %v1161_v49, 0  ;;  %v1488_v21 = vmul.f32 %v1460_v32, %v1245_v5  ;;  %v1213_v63 = vrot.slane %v1192_v58, %v2379_v41 }
 0x120   : > { %v1300_v48 = vmin.f32 %v1298_v59, %v1299_v29  ;;  %v1495_v14 = vadd.f32 %v1487_v13, %v1486_v12  ;;  %v1247_v46 = vsel %vm1238_vm13, %v2702_v31, %v2663_v19  ;;  %v1508_v61 = vadd.f32 %v1507_v47, %v1506_v57 }
 0x121   : > { %1928 = vst [vmem:[%s2475_s16 + $0xb0] sm:$0xff] %v1247_v46  ;;  %v1195_v24 = vsel %vm1186_vm1, 1, %v2189_v4  ;;  %v1194_v1 = vsel %vm1185_vm2, 1, %v2189_v4  ;;  %v1197_v27 = vsel %vm1188_vm15, 1, %v2189_v4  ;;  %v1165_v19 = vcombine.high %v1161_v49, %v1161_v49 }
 0x122   : > { %v1301_v7 = vrot.slane %v1300_v48, 2  ;;  %vm1237_vm3 = vcmp.eq.s32.totalorder %v1213_v63, 1  ;;  %v1496_v45 = vadd.f32 %v1495_v14, %v1488_v21  ;;  %v1225_v15 = vrot.slane %v1195_v24, %v2379_v41 }
 0x123   : > { %v1246_v36 = vsel %vm1237_vm3, %v2702_v31, %v2639_v51  ;;  %v1221_v53 = vrot.slane %v1194_v1, %v2379_v41  ;;  %v1233_v8 = vrot.slane %v1197_v27, %v2379_v41  ;;  %vm1187_vm4 = vcmp.ne.s32.totalorder %v1165_v19, 0 }
 0x124   : > { %v1302_v30 = vmin.f32 %v1300_v48, %v1301_v7  ;;  %1927 = vst [vmem:[%s2475_s16 + $0xa8] sm:$0xff] %v1246_v36  ;;  %v1489_v25 = vmul.f32 %v1464_v26, %v1246_v36  ;;  %vm1240_vm5 = vcmp.eq.s32.totalorder %v1225_v15, 1  ;;  %v1196_v18 = vsel %vm1187_vm4, 1, %v2189_v4 }
 0x125   : > { %v1249_v3 = vsel %vm1240_vm5, %v2702_v31, %v2687_v43  ;;  %vm1239_vm6 = vcmp.eq.s32.totalorder %v1221_v53, 1  ;;  %vm1242_vm7 = vcmp.eq.s32.totalorder %v1233_v8, 1  ;;  %v1509_v11 = vrot.slane %v1508_v61, 2 }
 0x126   : > { %v1303_v40 = vrot.slane %v1302_v30, 1  ;;  %v1497_v62 = vadd.f32 %v1496_v45, %v1489_v25  ;;  %1930 = vst [vmem:[%s2475_s16 + $0xc0] sm:$0xff] %v1249_v3  ;;  %v1248_v43 = vsel %vm1239_vm6, %v2702_v31, %v2652_v10  ;;  %v2790_v50 = vsel %vm1242_vm7, %v2702_v31, %v2696_v38 }
 0x127   : > { %v1229_v4 = vrot.slane %v1196_v18, %v2379_v41  ;;  %v1490_v0 = vmul.f32 %v1468_v33, %v1247_v46  ;;  %1929 = vst [vmem:[%s2475_s16 + $0xb8] sm:$0xff] %v1248_v43  ;;  %1932 = vst [vmem:[%s2475_s16 + $0xd0] sm:$0xff] %v2790_v50  ;;  %v1476_v41 = vpop.permute.xlu1 %1475  ;;  %v1510_v56 = vadd.f32 %v1509_v11, %v1508_v61 }
 0x128   : > { %v2778_v51 = vmin.f32 %v1302_v30, %v1303_v40  ;;  %v1492_v59 = vmul.f32 %v1476_v41, %v1249_v3 }
 0x129   : > { %v1498_v55 = vadd.f32 %v1497_v62, %v1490_v0  ;;  %vm1241_vm11 = vcmp.eq.s32.totalorder %v1229_v4, 1 }
 0x12a   : > { %vm1305_vm8 = vcmp.eq.f32.partialorder %v2715_v16, %v2778_v51  ;;  %vm1306_vm9 = vcmp.eq.f32.partialorder %v2737_v9, %v2778_v51  ;;  %v2800_v54 = vmul.f32 %v2507_v37, %v2778_v51  ;;  %v1491_v9 = vmul.f32 %v1472_v34, %v1248_v43 }
 0x12b   : > { %v1307_v10 = vsel %vm1305_vm8, %v2350_v20, 9  ;;  %v1308_v38 = vsel %vm1306_vm9, %v2503_v35, 9  ;;  %v1250_v5 = vsel %vm1241_vm11, %v2702_v31, %v2671_v52 }
 0x12c   : > { %v1309_v16 = vsel %vm366_vm0, %v1308_v38, 2147483647  ;;  %v1335_v37 = vsub.f32 %v2710_v22, %v2800_v54  ;;  %v1499_v57 = vadd.f32 %v1498_v55, %v1491_v9  ;;  %1931 = vst [vmem:[%s2475_s16 + $0xc8] sm:$0xff] %v1250_v5  ;;  %v1493_v60 = vmul.f32 %v1480_v6, %v1250_v5 }
 0x12d   : > { %vm1310_vm10 = vcmp.lt.s32.totalorder %v1307_v10, %v1309_v16 }
 0x12e   : > { %v1311_v17 = vsel %vm1310_vm10, %v1307_v10, %v1309_v16  ;;  %v1500_v29 = vadd.f32 %v1499_v57, %v1492_v59 }
 0x12f   : > { %v1312_v2 = vrot.slane %v1311_v17, 4 }
 0x130   : > { %2059 = shalt.err (!%p2056_p12)
}
 0x131   : > { %s2060_s16 = scalar_lea.hbm %s2812_s28, 3456  ;;  %s2064_s23 = scalar_lea.hbm %s2965_s6, 6912 }
 0x132   : > { %p2061_p13 = scmp.ne.s32.totalorder %s2812_s28, %s2060_s16  ;;  %p2065_p4 = scmp.lt.u32.totalorder %s2812_s28, %s2965_s6 }
 0x133   : > { %p2066_p5 = scmp.lt.u32.totalorder %s2064_s23, %s2060_s16  ;;  %p2068_p7 = scmp.lt.u32.totalorder %s2060_s16, %s2812_s28 }
 0x134   : > { %p2062_p2 = pnand %p2061_p13, %p2281_p10 }
 0x135   : > { %p2067_p6 = por %p2066_p5, %p2065_p4 }
 0x136   : > { %p2063_p3 = pneg %p2062_p2 }
 0x137   : > { %p2069_p8 = por %p2068_p7, %p2067_p6 }
 0x139   : > { %p2070_p9 = pnand %p2069_p8, %p2063_p3 }
 0x13b   : > { %2073 = shalt.err (!%p2070_p9)
}
 0x13c   : > { %s2969_s20 = smov 128   ;;  %s2193_s27 = smov 256   ;;  %vm1313_vm12 = vcmp.lt.s32.totalorder %v1311_v17, %v1312_v2  ;;  %v1484_v52 = vpop.permute.xlu1 %1483  ;;  %v1511_v47 = vrot.slane %v1510_v56, 1  ;;  %v1501_v13 = vadd.f32 %v1500_v29, %v1493_v60  ;;  %v1513_v48 = vstv %s2819_s14 }
 0x13d   : > { %s2194_s12 = smov 8   ;;  %s2974_s26 = scalar_lea.sflag [#allocation11], %s2783_s25  ;;  %v1314_v31 = vsel %vm1313_vm12, %v1311_v17, %v1312_v2  ;;  %v1494_v12 = vmul.f32 %v1484_v52, %v2790_v50  ;;  %v1334_v14 = vmul.f32 %v2509_v39, %v2778_v51 }
 0x13e   : > { %1943 = dma.vmem_to_hbm [thread:$0]  (%p2281_p10), %s2817_s24, 3456, %s2812_s28, %s2974_s26, %s2969_s20, %s2193_s27, %s2194_s12   ;;  %v1315_v32 = vrot.slane %v1314_v31, 2  ;;  %v1512_v46 = vadd.f32 %v1511_v47, %v1510_v56 }
 0x13f   : > { %s1747_s19 = sshll.u32 %s2625_s21, 4  ;;  %v1502_v28 = vadd.f32 %v1501_v13, %v1494_v12  ;;  %s2975_s16 = sshll.u32 %s2178_s8, 7  ;;  %s2853_s19 = int_to_ptr.vmem [resolvable:$true] %s1747_s19 }
 0x140   : > { %s2860_s24 = scalar_lea.hbm %s2966_s7, %s2975_s16  ;;  %vm1316_vm13 = vcmp.lt.s32.totalorder %v1314_v31, %v1315_v32  ;;  %s2074_s28 = scalar_lea.vmem %s2853_s19, 384 }
 0x141   : > { %v1317_v49 = vsel %vm1316_vm13, %v1314_v31, %v1315_v32  ;;  %1933 = vst [vmem:[%s2625_s21 + $0x10] sm:$0xff] %v1502_v28  ;;  %p2075_p11 = scmp.ne.s32.totalorder %s2853_s19, %s2074_s28  ;;  %s2195_s26 = smov [#allocation12]  }
 0x142   : > { %v1318_v58 = vrot.slane %v1317_v49, 1  ;;  %s2078_s23 = sshll.u32 %s2195_s26, 4  ;;  %s2079_s23 = int_to_ptr.vmem [resolvable:$false] %s2078_s23 }
 0x143   : > { %p2076_p12 = pnand %p2075_p11, %p2281_p10  ;;  %s2080_s16 = scalar_lea.vmem %s2079_s23, 768 }
 0x144   : > { %p2081_p2 = scmp.lt.s32.totalorder %s2853_s19, %s2079_s23  ;;  %p2082_p3 = scmp.lt.s32.totalorder %s2080_s16, %s2074_s28 }
 0x145   : > { %p2077_p13 = pneg %p2076_p12 }
 0x146   : > { %p2083_p4 = por %p2082_p3, %p2081_p2 }
 0x148   : > { %p2084_p5 = pnand %p2083_p4, %p2077_p13 }
 0x14a   : > { %2087 = shalt.err (!%p2084_p5)
}
 0x14b   : > { %s2088_s21 = scalar_lea.hbm %s2860_s24, 384  ;;  %s2092_s26 = scalar_lea.hbm %s2966_s7, 768 }
 0x14c   : > { %p2089_p6 = scmp.ne.s32.totalorder %s2860_s24, %s2088_s21  ;;  %p2093_p9 = scmp.lt.u32.totalorder %s2860_s24, %s2966_s7 }
 0x14d   : > { %p2094_p11 = scmp.lt.u32.totalorder %s2092_s26, %s2088_s21  ;;  %p2096_p13 = scmp.lt.u32.totalorder %s2088_s21, %s2860_s24 }
 0x14e   : > { %p2090_p7 = pnand %p2089_p6, %p2281_p10 }
 0x14f   : > { %p2095_p12 = por %p2094_p11, %p2093_p9 }
 0x150   : > { %p2091_p8 = pneg %p2090_p7 }
 0x151   : > { %p2097_p2 = por %p2096_p13, %p2095_p12 }
 0x153   : > { %p2098_p3 = pnand %p2097_p2, %p2091_p8 }
 0x155   : > { %2101 = shalt.err (!%p2098_p3)
}
 0x156   : > { %s2976_s28 = smov 128   ;;  %s2977_s16 = scalar_lea.sflag [#allocation11], %s2783_s25  ;;  %vm1319_vm14 = vcmp.lt.s32.totalorder %v1317_v49, %v1318_v58  ;;  %v1336_v7 = vsub.f32 %v2731_v42, %v1334_v14  ;;  %v1514_v61 = vadd.f32 %v1513_v48, %v1512_v46 }
 0x157   : > { %1944 = dma.vmem_to_hbm [thread:$0]  (%p2281_p10), %s2853_s19, 384, %s2860_s24, %s2977_s16, %s2976_s28, %s2193_s27, %s2194_s12   ;;  %v1320_v39 = vsel %vm1319_vm14, %v1317_v49, %v1318_v58 }
 0x158   : > { %vm1321_vm15 = vcmp.eq.s32.totalorder %v2350_v20, %v1320_v39  ;;  %vm1322_vm1 = vcmp.eq.s32.totalorder %v2503_v35, %v1320_v39  ;;  %s1935_s25 = sshll.u32 %s2178_s8, 4  ;;  %s331_s20 = scalar_lea.vmem [#allocation8], %s2331_s22 }
 0x159   : > { %v1337_v21 = vsel %vm1321_vm15, %v2778_v51, %v1335_v37  ;;  %v1338_v63 = vsel %vm1322_vm1, %v2778_v51, %v1336_v7  ;;  %v1515_v26 = vsel %vm1321_vm15, %v1514_v61, %v2721_v23  ;;  %v1516_v24 = vsel %vm1322_vm1, %v1514_v61, %v2733_v44  ;;  %s1714_s27 = sshll.u32 %s331_s20, 4  ;;  %s2908_s24 = scalar_lea.hbm %s2964_s5, %s1935_s25  ;;  %s2910_s27 = int_to_ptr.vmem [resolvable:$true] %s1714_s27 }
 0x15a   : > { %1340 = vst [vmem:[#allocation2 + $0x8] sm:$0x1] %v1338_v63  ;;  %1518 = vst [vmem:[#allocation3 + $0x8] sm:$0x1] %v1516_v24  ;;  %v1674_v1 = vmul.f32 %v1515_v26, %v1337_v21  ;;  %s1692_s21 = scalar_lea.sflag [#allocation9], %s2331_s22  ;;  %s2102_s14 = scalar_lea.vmem %s2910_s27, 16 }
 0x15b   : > { %p2103_p4 = scmp.ne.s32.totalorder %s2910_s27, %s2102_s14  ;;  %s2196_s8 = smov [#allocation8]  }
 0x15c   : > { %s2106_s11 = sshll.u32 %s2196_s8, 4  ;;  %s2107_s11 = int_to_ptr.vmem [resolvable:$false] %s2106_s11 }
 0x15d   : > { %p2104_p5 = pnand %p2103_p4, %p2281_p10  ;;  %s2108_s26 = scalar_lea.vmem %s2107_s11, 32 }
 0x15e   : > { %p2109_p7 = scmp.lt.s32.totalorder %s2910_s27, %s2107_s11  ;;  %p2110_p8 = scmp.lt.s32.totalorder %s2108_s26, %s2102_s14 }
 0x15f   : > { %p2105_p6 = pneg %p2104_p5 }
 0x160   : > { %p2111_p9 = por %p2110_p8, %p2109_p7 }
 0x161   : > { %v1671_v42 = vld [vmem:[#allocation2 + $0x8] sm:$0x1]  ;;  %v1673_v27 = vld [vmem:[#allocation3 + $0x8] sm:$0x1] }
 0x162   : > { %v1675_v20 = vmul.f32 %v1673_v27, %v1671_v42  ;;  %p2112_p11 = pnand %p2111_p9, %p2105_p6 }
 0x164   : > { %v1676_v35 = vsel %vm366_vm0, %v1675_v20, 0.0 }
 0x165   : > { %v1677_v19 = vadd.f32 %v1676_v35, %v1674_v1 }
 0x167   : > { %v1678_v22 = vrot.slane %v1677_v19, 4 }
 0x169   : > { %v1679_v30 = vadd.f32 %v1678_v22, %v1677_v19 }
 0x16b   : > { %v1680_v45 = vrot.slane %v1679_v30, 2 }
 0x16d   : > { %v1681_v15 = vadd.f32 %v1680_v45, %v1679_v30 }
 0x16f   : > { %v1682_v33 = vrot.slane %v1681_v15, 1 }
 0x171   : > { %v1683_v23 = vadd.f32 %v1682_v33, %v1681_v15 }
 0x173   : > { %v1934_v44 = vmul.f32 -1.442695, %v1683_v23 }
 0x175   : > { %2030 = vpow2.f32 %v1934_v44 }
 0x17f   : > { %v2031_v36 = vpop.eup %2030 }
 0x180   : > { %v1687_v53 = vadd.f32 1.0, %v2031_v36 }
 0x182   : > { %2032 = vrcp.f32 %v1687_v53 }
 0x18c   : > { %v2033_v8 = vpop.eup %2032 }
 0x18d   : > { %1690 = vst [vmem:[%s331_s20] sm:$0x1] %v2033_v8 }
 0x18e   : > { %2115 = shalt.err (!%p2112_p11)
}
 0x18f   : > { %s2116_s22 = scalar_lea.hbm %s2908_s24, 16  ;;  %s2120_s16 = scalar_lea.hbm %s2964_s5, 32 }
 0x190   : > { %p2117_p12 = scmp.ne.s32.totalorder %s2908_s24, %s2116_s22  ;;  %p2121_p3 = scmp.lt.u32.totalorder %s2908_s24, %s2964_s5 }
 0x191   : > { %p2122_p4 = scmp.lt.u32.totalorder %s2120_s16, %s2116_s22  ;;  %p2124_p6 = scmp.lt.u32.totalorder %s2116_s22, %s2908_s24 }
 0x192   : > { %p2118_p13 = pnand %p2117_p12, %p2281_p10 }
 0x193   : > { %p2123_p5 = por %p2122_p4, %p2121_p3 }
 0x194   : > { %p2119_p2 = pneg %p2118_p13 }
 0x195   : > { %p2125_p7 = por %p2124_p6, %p2123_p5 }
 0x197   : > { %p2126_p8 = pnand %p2125_p7, %p2119_p2 }
 0x199   : > { %2129 = shalt.err (!%p2126_p8)
}
 0x19a   : > { %1942 = dma.vmem_to_hbm [thread:$0]  (%p2281_p10), %s2910_s27, 16, %s2908_s24, %s1692_s21  }
 0x19b PF: > { %s1762_s12 = sand.u32 1, %s2166_s29   ;;  %p1949_p9 = pnand %p1903_p1, %p2294_p0 }
 0x19c   : > { %s1763_s19 = scalar_lea.sflag [#allocation9], %s1762_s12 }
 0x19d   : > { %2157 = dma.done.wait (!%p1949_p9), %s1763_s19, 16  }
 0x19e   : > { %2159 = vsyncadd (!%p1949_p9), %s1763_s19, 4294967280  ;;  %s2978_s14 = sadd.s32 4294967294, %s2186_s10  }
 0x19f   : > { %s1770_s8 = sand.u32 1, %s2978_s14  }
 0x1a0   : > { %s1771_s11 = scalar_lea.sflag [#allocation11], %s1770_s8 }
 0x1a1   : > { %2161 = dma.done.wait (!%p1949_p9), %s1771_s11, 3840  }
 0x1a2   : > { %2163 = vsyncadd (!%p1949_p9), %s1771_s11, 4294963456  ;;  %s30_s10 = sadd.s32 1, %s2186_s10   ;;  %s2979_s29 = smov %s2170_s0 }
 0x1a3   : > { %p27_p10 = scmp.ge.s32.totalorder %s30_s10, 4   ;;  %s2980_s0 = smov %s2174_s30 }
 0x1a4   : > { %s2981_s30 = smov %s2292_s17  ;;  %s2982_s8 = smov %s2182_s9 }
 0x1a5   : > { %s2983_s9 = smov %s2985_s13  ;;  %29 = sbr.rel (!%p27_p10) target bundleno = 21 (0x15), region = 163 }
 0x1ac   :  { %1785 = vsyncpa [#allocation9], 1 }
 0x1ad   :  { %1787 = vsyncpa [#allocation9 + $0x1], 1 }
 0x1ae   :  { %1788 = vsyncpa [#allocation11], 1 }
 0x1af   :  { %1790 = vsyncpa [#allocation11 + $0x1], 1 }

</bundles_post_ra>
